<compile_context>
chip_gen: v5e
topology: v5e:2x2
jax: 0.10.0
libtpu: 0.0.40
codegen_flags: <defaults>
</compile_context>

<pallas_src>
import jax
import jax.numpy as jnp
from jax.experimental import pallas as pl
from jax.experimental.pallas import tpu as pltpu

BN_EPS = 1e-5


def _sigmoid(z):
    # exact reciprocal (approx=True is ~free on the EUP slot but costs a few ULPs;
    # keep exact so the f32 self-check stays tight).
    return pl.reciprocal(1.0 + jnp.exp(-z), approx=False)


def _ca_sa_kernel(x_ref, w1_ref, b1_ref, w2_ref, b2_ref, wsa_ref,
                  scale_ref, conv_ref, stats_ref):
    """Per batch element: channel-attention scale + SA compress + 3x3 SA conv + BN partials.

    x_ref:     (1, H, W, C)  input feature map (NHWC, C on the lane axis)
    w1_ref:    (mid, C)      first 1x1 conv of conv_ca (PyTorch (out, in) layout)
    b1_ref:    (1, mid)
    w2_ref:    (C, mid)      second 1x1 conv of conv_ca (PyTorch (out, in) layout)
    b2_ref:    (1, C)
    wsa_ref:   (18,) SMEM    3x3 SA conv taps: [9 taps for the max map, 9 for the mean map]
    scale_ref: (1, 1, C)     out: sigmoid(channel attention), per batch
    conv_ref:  (1, H, W)     out: raw (pre-BN) SA conv map, lane-dense over W
    stats_ref: (1, 1, 2)     out: [sum, sum of squares] of the conv map (BN partials)
    """
    _, H, W, C = x_ref.shape
    x = x_ref[0].astype(jnp.float32)                        # (H, W, C)

    # ---------------- channel attention (CALayer) ----------------
    # Spatial avg / max pooling; two-step reductions keep everything >= 2-D.
    avg = jnp.sum(jnp.sum(x, axis=0), axis=0, keepdims=True) * (1.0 / (H * W))   # (1, C)
    mx = jnp.max(jnp.max(x, axis=0), axis=0, keepdims=True)                      # (1, C)
    pooled = jnp.concatenate([avg, mx], axis=0)             # (2, C)  rows = [avg, max]

    # Tiny MLP kept off the MXU: broadcast-MAC + reduce over the lane axis.
    # h[b, m] = sum_c pooled[b, c] * w1[m, c]
    h = jnp.sum(pooled[:, None, :] * w1_ref[...][None, :, :], axis=-1) + b1_ref[...]
    h = jnp.maximum(h, 0.0)                                 # (2, mid)
    # att[b, c] = sum_m h[b, m] * w2[c, m]
    att = jnp.sum(h[:, None, :] * w2_ref[...][None, :, :], axis=-1)              # (2, C)
    # Sum of the two pooled branches.  NOTE: the 2nd conv bias is intentionally added
    # once per branch (matches the per-branch PyTorch MLP) -> 2 * b2.  Not a bug.
    att_sum = att[0:1, :] + att[1:2, :] + 2.0 * b2_ref[...]                      # (1, C)
    ca_scale = _sigmoid(att_sum)                            # (1, C)
    scale_ref[0] = ca_scale

    # x * scale stays in VMEM only (never written to HBM).
    x_ca = x * ca_scale.reshape(1, 1, C)                    # (H, W, C)

    # ------- spatial attention compress, lane-dense (H, W): W on the lane axis -------
    c_max = jnp.max(x_ca, axis=-1)                          # (H, W)  torch channel 0
    c_mean = jnp.sum(x_ca, axis=-1) * (1.0 / C)             # (H, W)  torch channel 1

    # 3x3 conv, padding=1, bias=False, on the small lane-dense maps.
    def pad1(m):                                            # (H, W) -> (H+2, W+2)
        zr = jnp.zeros((1, W), jnp.float32)
        m = jnp.concatenate([zr, m, zr], axis=0)
        zc = jnp.zeros((H + 2, 1), jnp.float32)
        return jnp.concatenate([zc, m, zc], axis=1)

    pm = pad1(c_max)
    pa = pad1(c_mean)
    conv = jnp.zeros((H, W), jnp.float32)
    for kh in range(3):
        for kw in range(3):
            conv = conv + pm[kh:kh + H, kw:kw + W] * wsa_ref[kh * 3 + kw] \
                        + pa[kh:kh + H, kw:kw + W] * wsa_ref[9 + kh * 3 + kw]
    conv_ref[0] = conv

    # BN batch-stat partials (finished across the batch in the wrapper).
    s1 = jnp.sum(jnp.sum(conv, axis=0, keepdims=True), axis=1, keepdims=True)         # (1, 1)
    s2 = jnp.sum(jnp.sum(conv * conv, axis=0, keepdims=True), axis=1, keepdims=True)  # (1, 1)
    stats_ref[0] = jnp.concatenate([s1, s2], axis=1)        # (1, 2)


def _apply_kernel(x_ref, scale_ref, conv_ref, bn_ref, o_ref):
    """out = x * ca_scale * sigmoid(bn(conv)), recomputed from the original x.

    x_ref:     (1, TH, W, C)
    scale_ref: (1, 1, C)      per-batch channel-attention scale
    conv_ref:  (1, TH, W)     raw SA conv map (lane-dense over W)
    bn_ref:    (2,) SMEM      folded BN: bn(conv) = conv * a + b
    o_ref:     (1, TH, W, C)
    """
    a = bn_ref[0]
    b = bn_ref[1]
    sa = _sigmoid(conv_ref[...] * a + b)                    # (1, TH, W)
    x = x_ref[...].astype(jnp.float32)
    # (..., 1) -> (..., C) lane broadcast for the spatial map; (1,1,C) channel broadcast.
    out = x * scale_ref[...] * sa[..., None]
    o_ref[...] = out.astype(o_ref.dtype)


def _choose_apply_tile(H, W, C, itemsize, n_batch, target_bytes=2 * 1024 * 1024):
    """H tile for the apply kernel: ~MiB blocks, multiple of 8, >= 2 tiles when N == 1."""
    if H % 8 != 0:
        return H
    cands = [t for t in range(8, H + 1, 8) if H % t == 0]
    fitting = [t for t in cands if t * W * C * itemsize <= target_bytes]
    if not fitting:
        return cands[0]
    th = max(fitting)
    if n_batch == 1 and th == H:
        smaller = [t for t in fitting if t < H]
        if smaller:
            th = max(smaller)   # give the second v7x TensorCore some work
    return th


@jax.jit
def cbam_forward(x_nchw, w1, b1, w2, b2, w_sa, bn_gamma, bn_beta):
    """CBAM forward (training-mode BN batch stats).  PyTorch layouts:
       x (N,C,H,W), w1 (mid,C,1,1), b1 (mid,), w2 (C,mid,1,1), b2 (C,),
       w_sa (1,2,3,3), bn_gamma/bn_beta (1,).  Returns (N,C,H,W) in x's dtype."""
    N, C, H, W = x_nchw.shape
    mid = w1.shape[0]

    # Wrapper glue: NCHW -> NHWC so C sits on the lane axis.  x keeps its dtype
    # (bf16 in -> bf16 out halves HBM traffic); all stats/MLP/BN math is f32 in-kernel.
    x = jnp.transpose(x_nchw, (0, 2, 3, 1))                                # (N, H, W, C)
    w1m = w1.reshape(mid, C).astype(jnp.float32)                           # (mid, C)
    b1m = b1.reshape(1, mid).astype(jnp.float32)
    w2m = w2.reshape(C, mid).astype(jnp.float32)                           # (C, mid)
    b2m = b2.reshape(1, C).astype(jnp.float32)
    wsa = w_sa.reshape(18).astype(jnp.float32)                             # SMEM scalars

    itemsize = x.dtype.itemsize
    blk1_bytes = H * W * C * max(itemsize, 4)
    vmem1 = int(min(48 * 1024 * 1024, max(32 * 1024 * 1024, 6 * blk1_bytes)))

    flops1 = N * (6 * H * W * C + 40 * H * W + 8 * C * mid)
    ca_scale, sa_conv, bn_stats = pl.pallas_call(
        _ca_sa_kernel,
        out_shape=(jax.ShapeDtypeStruct((N, 1, C), jnp.float32),
                   jax.ShapeDtypeStruct((N, H, W), jnp.float32),
                   jax.ShapeDtypeStruct((N, 1, 2), jnp.float32)),
        grid=(N,),
        in_specs=[
            pl.BlockSpec((1, H, W, C), lambda n: (n, 0, 0, 0)),
            pl.BlockSpec((mid, C), lambda n: (0, 0)),
            pl.BlockSpec((1, mid), lambda n: (0, 0)),
            pl.BlockSpec((C, mid), lambda n: (0, 0)),
            pl.BlockSpec((1, C), lambda n: (0, 0)),
            pl.BlockSpec(memory_space=pltpu.MemorySpace.SMEM),
        ],
        out_specs=[
            pl.BlockSpec((1, 1, C), lambda n: (n, 0, 0)),
            pl.BlockSpec((1, H, W), lambda n: (n, 0, 0)),
            pl.BlockSpec((1, 1, 2), lambda n: (n, 0, 0)),
        ],
        compiler_params=pltpu.CompilerParams(
            dimension_semantics=("parallel",),
            vmem_limit_bytes=vmem1),
        cost_estimate=pl.CostEstimate(
            flops=flops1, transcendentals=N * (C + 1),
            bytes_accessed=itemsize * N * H * W * C + 4 * N * (H * W + C + 2)),
    )(x, w1m, b1m, w2m, b2m, wsa)

    # Training-mode BatchNorm2d(1): biased batch stats over (N,H,W) from the in-kernel
    # partial sums, folded into one scale + shift.  (Running-stat updates not modelled.)
    cnt = float(N * H * W)
    tot = jnp.sum(bn_stats[:, 0, :], axis=0)                               # (2,)
    mean = tot[0] / cnt
    var = jnp.maximum(tot[1] / cnt - mean * mean, 0.0)
    a = bn_gamma.reshape(()).astype(jnp.float32) * jax.lax.rsqrt(var + BN_EPS)
    b = bn_beta.reshape(()).astype(jnp.float32) - mean * a
    bn_ab = jnp.stack([a, b])

    TH = _choose_apply_tile(H, W, C, itemsize, N)
    blk2_bytes = TH * W * C * itemsize
    vmem2 = int(min(48 * 1024 * 1024, max(16 * 1024 * 1024, 8 * blk2_bytes)))

    out_nhwc = pl.pallas_call(
        _apply_kernel,
        out_shape=jax.ShapeDtypeStruct((N, H, W, C), x.dtype),
        grid=(N, H // TH),
        in_specs=[
            pl.BlockSpec((1, TH, W, C), lambda n, h: (n, h, 0, 0)),
            pl.BlockSpec((1, 1, C), lambda n, h: (n, 0, 0)),
            pl.BlockSpec((1, TH, W), lambda n, h: (n, h, 0)),
            pl.BlockSpec(memory_space=pltpu.MemorySpace.SMEM),
        ],
        out_specs=pl.BlockSpec((1, TH, W, C), lambda n, h: (n, h, 0, 0)),
        input_output_aliases={0: 0},        # overwrite the NHWC copy of x in place
        compiler_params=pltpu.CompilerParams(
            dimension_semantics=("parallel", "parallel"),
            vmem_limit_bytes=vmem2),
        cost_estimate=pl.CostEstimate(
            flops=N * H * W * (2 * C + 3), transcendentals=N * H * W,
            bytes_accessed=2 * itemsize * N * H * W * C + 4 * N * H * W),
    )(x, ca_scale, sa_conv, bn_ab)

    return jnp.transpose(out_nhwc, (0, 3, 1, 2))                           # back to NCHW


def _reference_cbam(x, w1, b1, w2, b2, w_sa, g, be, eps=BN_EPS):
    """Pure-JAX reference of the PyTorch CBAM forward (training-mode BN)."""
    mid = w1.shape[0]
    C = x.shape[1]
    w1m = w1.reshape(mid, C)
    w2m = w2.reshape(C, mid)

    def mlp(p):                                             # p: (N, C)
        h = jnp.maximum(p @ w1m.T + b1, 0.0)
        return h @ w2m.T + b2

    avg = jnp.mean(x, axis=(2, 3))
    mx = jnp.max(x, axis=(2, 3))
    att = mlp(avg) + mlp(mx)
    x_ca = x * jax.nn.sigmoid(att)[:, :, None, None]

    xc = jnp.concatenate([jnp.max(x_ca, axis=1, keepdims=True),
                          jnp.mean(x_ca, axis=1, keepdims=True)], axis=1)
    conv = jax.lax.conv_general_dilated(
        xc, w_sa, window_strides=(1, 1), padding="SAME",
        dimension_numbers=("NCHW", "OIHW", "NCHW"))
    m = jnp.mean(conv)
    v = jnp.mean(jnp.square(conv - m))
    bn = (conv - m) * jax.lax.rsqrt(v + eps) * g.reshape(1, 1, 1, 1) + be.reshape(1, 1, 1, 1)
    return x_ca * jax.nn.sigmoid(bn)


if __name__ == "__main__":
    # CBAM(in_channels=16, reduction=2, pool_types=['avg', 'max'])
    N, C, H, W = 2, 16, 16, 16
    reduction = 2
    mid = C // reduction

    key = jax.random.PRNGKey(0)
    kx, k1, kb1, k2, kb2, ks = jax.random.split(key, 6)
    x = jax.random.normal(kx, (N, C, H, W), jnp.float32)
    # conv_ca: Conv2d(C, mid, 1, bias=True) -> ReLU -> Conv2d(mid, C, 1, bias=True)
    w1 = 0.3 * jax.random.normal(k1, (mid, C, 1, 1), jnp.float32)
    b1 = 0.1 * jax.random.normal(kb1, (mid,), jnp.float32)
    w2 = 0.3 * jax.random.normal(k2, (C, mid, 1, 1), jnp.float32)
    b2 = 0.1 * jax.random.normal(kb2, (C,), jnp.float32)
    # conv_sa: Conv2d(2, 1, 3, stride=1, padding=1, bias=False)
    w_sa = 0.3 * jax.random.normal(ks, (1, 2, 3, 3), jnp.float32)
    # BatchNorm2d(1) on a fresh module (training mode): gamma=1, beta=0, batch stats.
    bn_gamma = jnp.ones((1,), jnp.float32)
    bn_beta = jnp.zeros((1,), jnp.float32)

    out = cbam_forward(x, w1, b1, w2, b2, w_sa, bn_gamma, bn_beta)
    out = jax.block_until_ready(out)
    assert out.shape == (N, C, H, W), out.shape

    ref = _reference_cbam(x, w1, b1, w2, b2, w_sa, bn_gamma, bn_beta)
    err = float(jnp.max(jnp.abs(out - ref)))
    assert err < 1e-3, f"max abs error {err}"
    print("KERNEL_OK")
</pallas_src>

<mosaic_0001>
module attributes {stable_mosaic.version = 11 : i64} {
  func.func @_ca_sa_kernel(%arg0: i32, %arg1: memref<1x16x16x16xf32, #tpu.memory_space<vmem>>, %arg2: memref<8x16xf32, #tpu.memory_space<vmem>>, %arg3: memref<1x8xf32, #tpu.memory_space<vmem>>, %arg4: memref<16x8xf32, #tpu.memory_space<vmem>>, %arg5: memref<1x16xf32, #tpu.memory_space<vmem>>, %arg6: memref<18xf32, #tpu.memory_space<smem>>, %arg7: memref<1x1x16xf32, #tpu.memory_space<vmem>>, %arg8: memref<1x16x16xf32, #tpu.memory_space<vmem>>, %arg9: memref<1x1x2xf32, #tpu.memory_space<vmem>>) attributes {dimension_semantics = [#tpu.dimension_semantics<parallel>], iteration_bounds = array<i64: 2>, scalar_prefetch = 0 : i64, scratch_operands = 0 : i64, tpu.core_type = #tpu.core_type<tc>, window_params = [{transform_indices = @transform_0, window_bounds = array<i64: 1, 16, 16, 16>}, {pipeline_mode = #tpu.pipeline_mode<synchronous>, transform_indices = @transform_1, window_bounds = array<i64: 8, 16>}, {pipeline_mode = #tpu.pipeline_mode<synchronous>, transform_indices = @transform_2, window_bounds = array<i64: 1, 8>}, {pipeline_mode = #tpu.pipeline_mode<synchronous>, transform_indices = @transform_3, window_bounds = array<i64: 16, 8>}, {pipeline_mode = #tpu.pipeline_mode<synchronous>, transform_indices = @transform_4, window_bounds = array<i64: 1, 16>}, {transform_indices = @transform_5, window_bounds = array<i64: 18>}, {transform_indices = @transform_6, window_bounds = array<i64: 1, 1, 16>}, {transform_indices = @transform_7, window_bounds = array<i64: 1, 16, 16>}, {transform_indices = @transform_8, window_bounds = array<i64: 1, 1, 2>}]} {
    %c0 = arith.constant 0 : index
    %c0_0 = arith.constant 0 : index
    %c0_1 = arith.constant 0 : index
    %c0_2 = arith.constant 0 : index
    %0 = vector.load %arg1[%c0, %c0_0, %c0_1, %c0_2] : memref<1x16x16x16xf32, #tpu.memory_space<vmem>>, vector<1x16x16x16xf32>
    %1 = vector.shape_cast %0 : vector<1x16x16x16xf32> to vector<16x16x16xf32>
    %cst = arith.constant dense<0.000000e+00> : vector<16x16xf32>
    %2 = vector.multi_reduction <add>, %1, %cst [0] : vector<16x16x16xf32> to vector<16x16xf32>
    %cst_3 = arith.constant dense<0.000000e+00> : vector<16xf32>
    %3 = vector.multi_reduction <add>, %2, %cst_3 [0] : vector<16x16xf32> to vector<16xf32>
    %4 = vector.shape_cast %3 : vector<16xf32> to vector<1x16xf32>
    %cst_4 = arith.constant 3.906250e-03 : f32
    %5 = vector.broadcast %cst_4 : f32 to vector<1x16xf32>
    %6 = arith.mulf %4, %5 : vector<1x16xf32>
    %cst_5 = arith.constant dense<0xFF800000> : vector<16x16xf32>
    %7 = vector.multi_reduction <maximumf>, %1, %cst_5 [0] : vector<16x16x16xf32> to vector<16x16xf32>
    %cst_6 = arith.constant dense<0xFF800000> : vector<16xf32>
    %8 = vector.multi_reduction <maximumf>, %7, %cst_6 [0] : vector<16x16xf32> to vector<16xf32>
    %9 = vector.shape_cast %8 : vector<16xf32> to vector<1x16xf32>
    %10 = tpu.concatenate %6, %9 in 0 : vector<1x16xf32>, vector<1x16xf32> -> vector<2x16xf32>
    %11 = vector.shape_cast %10 : vector<2x16xf32> to vector<2x1x16xf32>
    %c0_7 = arith.constant 0 : index
    %c0_8 = arith.constant 0 : index
    %12 = vector.load %arg2[%c0_7, %c0_8] : memref<8x16xf32, #tpu.memory_space<vmem>>, vector<8x16xf32>
    %13 = vector.shape_cast %12 : vector<8x16xf32> to vector<1x8x16xf32>
    %14 = vector.broadcast %11 : vector<2x1x16xf32> to vector<2x8x16xf32>
    %15 = vector.broadcast %13 : vector<1x8x16xf32> to vector<2x8x16xf32>
    %16 = arith.mulf %14, %15 : vector<2x8x16xf32>
    %cst_9 = arith.constant dense<0.000000e+00> : vector<2x8xf32>
    %17 = vector.multi_reduction <add>, %16, %cst_9 [2] : vector<2x8x16xf32> to vector<2x8xf32>
    %c0_10 = arith.constant 0 : index
    %c0_11 = arith.constant 0 : index
    %18 = vector.load %arg3[%c0_10, %c0_11] : memref<1x8xf32, #tpu.memory_space<vmem>>, vector<1x8xf32>
    %19 = vector.broadcast %18 : vector<1x8xf32> to vector<2x8xf32>
    %20 = arith.addf %17, %19 : vector<2x8xf32>
    %cst_12 = arith.constant 0.000000e+00 : f32
    %21 = vector.broadcast %cst_12 : f32 to vector<2x8xf32>
    %22 = arith.maximumf %20, %21 : vector<2x8xf32>
    %23 = vector.shape_cast %22 : vector<2x8xf32> to vector<2x1x8xf32>
    %c0_13 = arith.constant 0 : index
    %c0_14 = arith.constant 0 : index
    %24 = vector.load %arg4[%c0_13, %c0_14] : memref<16x8xf32, #tpu.memory_space<vmem>>, vector<16x8xf32>
    %25 = vector.shape_cast %24 : vector<16x8xf32> to vector<1x16x8xf32>
    %26 = vector.broadcast %23 : vector<2x1x8xf32> to vector<2x16x8xf32>
    %27 = vector.broadcast %25 : vector<1x16x8xf32> to vector<2x16x8xf32>
    %28 = arith.mulf %26, %27 : vector<2x16x8xf32>
    %cst_15 = arith.constant dense<0.000000e+00> : vector<2x16xf32>
    %29 = vector.multi_reduction <add>, %28, %cst_15 [2] : vector<2x16x8xf32> to vector<2x16xf32>
    %30 = vector.extract_strided_slice %29 {offsets = [0, 0], sizes = [1, 16], strides = [1, 1]} : vector<2x16xf32> to vector<1x16xf32>
    %31 = vector.extract_strided_slice %29 {offsets = [1, 0], sizes = [1, 16], strides = [1, 1]} : vector<2x16xf32> to vector<1x16xf32>
    %32 = arith.addf %30, %31 : vector<1x16xf32>
    %c0_16 = arith.constant 0 : index
    %c0_17 = arith.constant 0 : index
    %33 = vector.load %arg5[%c0_16, %c0_17] : memref<1x16xf32, #tpu.memory_space<vmem>>, vector<1x16xf32>
    %cst_18 = arith.constant 2.000000e+00 : f32
    %34 = vector.broadcast %cst_18 : f32 to vector<1x16xf32>
    %35 = arith.mulf %34, %33 : vector<1x16xf32>
    %36 = arith.addf %32, %35 : vector<1x16xf32>
    %cst_19 = arith.constant 0.000000e+00 : f32
    %37 = vector.broadcast %cst_19 : f32 to vector<1x16xf32>
    %38 = arith.subf %37, %36 : vector<1x16xf32>
    %39 = math.exp %38 : vector<1x16xf32>
    %cst_20 = arith.constant 1.000000e+00 : f32
    %40 = vector.broadcast %cst_20 : f32 to vector<1x16xf32>
    %41 = arith.addf %40, %39 : vector<1x16xf32>
    %42 = tpu.reciprocal %41 : vector<1x16xf32> -> vector<1x16xf32>
    %c0_21 = arith.constant 0 : index
    %c0_22 = arith.constant 0 : index
    %c0_23 = arith.constant 0 : index
    %43 = vector.load %arg7[%c0_21, %c0_22, %c0_23] : memref<1x1x16xf32, #tpu.memory_space<vmem>>, vector<1x1x16xf32>
    %44 = vector.shape_cast %43 : vector<1x1x16xf32> to vector<1x16xf32>
    %45 = vector.shape_cast %42 : vector<1x16xf32> to vector<1x1x16xf32>
    tpu.vector_store %arg7[%c0_21, %c0_22, %c0_23], %45 {strides = array<i32>} : memref<1x1x16xf32, #tpu.memory_space<vmem>>, vector<1x1x16xf32>,
    %46 = vector.shape_cast %42 : vector<1x16xf32> to vector<1x1x16xf32>
    %47 = vector.broadcast %46 : vector<1x1x16xf32> to vector<16x16x16xf32>
    %48 = arith.mulf %1, %47 : vector<16x16x16xf32>
    %cst_24 = arith.constant dense<0xFF800000> : vector<16x16xf32>
    %49 = vector.multi_reduction <maximumf>, %48, %cst_24 [2] : vector<16x16x16xf32> to vector<16x16xf32>
    %cst_25 = arith.constant dense<0.000000e+00> : vector<16x16xf32>
    %50 = vector.multi_reduction <add>, %48, %cst_25 [2] : vector<16x16x16xf32> to vector<16x16xf32>
    %cst_26 = arith.constant 6.250000e-02 : f32
    %51 = vector.broadcast %cst_26 : f32 to vector<16x16xf32>
    %52 = arith.mulf %50, %51 : vector<16x16xf32>
    %cst_27 = arith.constant 0.000000e+00 : f32
    %53 = vector.broadcast %cst_27 : f32 to vector<1x16xf32>
    %54 = tpu.concatenate %53, %49, %53 in 0 : vector<1x16xf32>, vector<16x16xf32>, vector<1x16xf32> -> vector<18x16xf32>
    %cst_28 = arith.constant 0.000000e+00 : f32
    %55 = vector.broadcast %cst_28 : f32 to vector<18x1xf32>
    %56 = tpu.concatenate %55, %54, %55 in 1 : vector<18x1xf32>, vector<18x16xf32>, vector<18x1xf32> -> vector<18x18xf32>
    %cst_29 = arith.constant 0.000000e+00 : f32
    %57 = vector.broadcast %cst_29 : f32 to vector<1x16xf32>
    %58 = tpu.concatenate %57, %52, %57 in 0 : vector<1x16xf32>, vector<16x16xf32>, vector<1x16xf32> -> vector<18x16xf32>
    %cst_30 = arith.constant 0.000000e+00 : f32
    %59 = vector.broadcast %cst_30 : f32 to vector<18x1xf32>
    %60 = tpu.concatenate %59, %58, %59 in 1 : vector<18x1xf32>, vector<18x16xf32>, vector<18x1xf32> -> vector<18x18xf32>
    %cst_31 = arith.constant 0.000000e+00 : f32
    %61 = vector.broadcast %cst_31 : f32 to vector<16x16xf32>
    %62 = vector.extract_strided_slice %56 {offsets = [0, 0], sizes = [16, 16], strides = [1, 1]} : vector<18x18xf32> to vector<16x16xf32>
    %c0_32 = arith.constant 0 : index
    %63 = memref.load %arg6[%c0_32] : memref<18xf32, #tpu.memory_space<smem>>
    %64 = vector.broadcast %63 : f32 to vector<16x16xf32>
    %65 = arith.mulf %62, %64 : vector<16x16xf32>
    %66 = arith.addf %61, %65 : vector<16x16xf32>
    %67 = vector.extract_strided_slice %60 {offsets = [0, 0], sizes = [16, 16], strides = [1, 1]} : vector<18x18xf32> to vector<16x16xf32>
    %c9 = arith.constant 9 : index
    %68 = memref.load %arg6[%c9] : memref<18xf32, #tpu.memory_space<smem>>
    %69 = vector.broadcast %68 : f32 to vector<16x16xf32>
    %70 = arith.mulf %67, %69 : vector<16x16xf32>
    %71 = arith.addf %66, %70 : vector<16x16xf32>
    %72 = vector.extract_strided_slice %56 {offsets = [0, 1], sizes = [16, 16], strides = [1, 1]} : vector<18x18xf32> to vector<16x16xf32>
    %c1 = arith.constant 1 : index
    %73 = memref.load %arg6[%c1] : memref<18xf32, #tpu.memory_space<smem>>
    %74 = vector.broadcast %73 : f32 to vector<16x16xf32>
    %75 = arith.mulf %72, %74 : vector<16x16xf32>
    %76 = arith.addf %71, %75 : vector<16x16xf32>
    %77 = vector.extract_strided_slice %60 {offsets = [0, 1], sizes = [16, 16], strides = [1, 1]} : vector<18x18xf32> to vector<16x16xf32>
    %c10 = arith.constant 10 : index
    %78 = memref.load %arg6[%c10] : memref<18xf32, #tpu.memory_space<smem>>
    %79 = vector.broadcast %78 : f32 to vector<16x16xf32>
    %80 = arith.mulf %77, %79 : vector<16x16xf32>
    %81 = arith.addf %76, %80 : vector<16x16xf32>
    %82 = vector.extract_strided_slice %56 {offsets = [0, 2], sizes = [16, 16], strides = [1, 1]} : vector<18x18xf32> to vector<16x16xf32>
    %c2 = arith.constant 2 : index
    %83 = memref.load %arg6[%c2] : memref<18xf32, #tpu.memory_space<smem>>
    %84 = vector.broadcast %83 : f32 to vector<16x16xf32>
    %85 = arith.mulf %82, %84 : vector<16x16xf32>
    %86 = arith.addf %81, %85 : vector<16x16xf32>
    %87 = vector.extract_strided_slice %60 {offsets = [0, 2], sizes = [16, 16], strides = [1, 1]} : vector<18x18xf32> to vector<16x16xf32>
    %c11 = arith.constant 11 : index
    %88 = memref.load %arg6[%c11] : memref<18xf32, #tpu.memory_space<smem>>
    %89 = vector.broadcast %88 : f32 to vector<16x16xf32>
    %90 = arith.mulf %87, %89 : vector<16x16xf32>
    %91 = arith.addf %86, %90 : vector<16x16xf32>
    %92 = vector.extract_strided_slice %56 {offsets = [1, 0], sizes = [16, 16], strides = [1, 1]} : vector<18x18xf32> to vector<16x16xf32>
    %c3 = arith.constant 3 : index
    %93 = memref.load %arg6[%c3] : memref<18xf32, #tpu.memory_space<smem>>
    %94 = vector.broadcast %93 : f32 to vector<16x16xf32>
    %95 = arith.mulf %92, %94 : vector<16x16xf32>
    %96 = arith.addf %91, %95 : vector<16x16xf32>
    %97 = vector.extract_strided_slice %60 {offsets = [1, 0], sizes = [16, 16], strides = [1, 1]} : vector<18x18xf32> to vector<16x16xf32>
    %c12 = arith.constant 12 : index
    %98 = memref.load %arg6[%c12] : memref<18xf32, #tpu.memory_space<smem>>
    %99 = vector.broadcast %98 : f32 to vector<16x16xf32>
    %100 = arith.mulf %97, %99 : vector<16x16xf32>
    %101 = arith.addf %96, %100 : vector<16x16xf32>
    %102 = vector.extract_strided_slice %56 {offsets = [1, 1], sizes = [16, 16], strides = [1, 1]} : vector<18x18xf32> to vector<16x16xf32>
    %c4 = arith.constant 4 : index
    %103 = memref.load %arg6[%c4] : memref<18xf32, #tpu.memory_space<smem>>
    %104 = vector.broadcast %103 : f32 to vector<16x16xf32>
    %105 = arith.mulf %102, %104 : vector<16x16xf32>
    %106 = arith.addf %101, %105 : vector<16x16xf32>
    %107 = vector.extract_strided_slice %60 {offsets = [1, 1], sizes = [16, 16], strides = [1, 1]} : vector<18x18xf32> to vector<16x16xf32>
    %c13 = arith.constant 13 : index
    %108 = memref.load %arg6[%c13] : memref<18xf32, #tpu.memory_space<smem>>
    %109 = vector.broadcast %108 : f32 to vector<16x16xf32>
    %110 = arith.mulf %107, %109 : vector<16x16xf32>
    %111 = arith.addf %106, %110 : vector<16x16xf32>
    %112 = vector.extract_strided_slice %56 {offsets = [1, 2], sizes = [16, 16], strides = [1, 1]} : vector<18x18xf32> to vector<16x16xf32>
    %c5 = arith.constant 5 : index
    %113 = memref.load %arg6[%c5] : memref<18xf32, #tpu.memory_space<smem>>
    %114 = vector.broadcast %113 : f32 to vector<16x16xf32>
    %115 = arith.mulf %112, %114 : vector<16x16xf32>
    %116 = arith.addf %111, %115 : vector<16x16xf32>
    %117 = vector.extract_strided_slice %60 {offsets = [1, 2], sizes = [16, 16], strides = [1, 1]} : vector<18x18xf32> to vector<16x16xf32>
    %c14 = arith.constant 14 : index
    %118 = memref.load %arg6[%c14] : memref<18xf32, #tpu.memory_space<smem>>
    %119 = vector.broadcast %118 : f32 to vector<16x16xf32>
    %120 = arith.mulf %117, %119 : vector<16x16xf32>
    %121 = arith.addf %116, %120 : vector<16x16xf32>
    %122 = vector.extract_strided_slice %56 {offsets = [2, 0], sizes = [16, 16], strides = [1, 1]} : vector<18x18xf32> to vector<16x16xf32>
    %c6 = arith.constant 6 : index
    %123 = memref.load %arg6[%c6] : memref<18xf32, #tpu.memory_space<smem>>
    %124 = vector.broadcast %123 : f32 to vector<16x16xf32>
    %125 = arith.mulf %122, %124 : vector<16x16xf32>
    %126 = arith.addf %121, %125 : vector<16x16xf32>
    %127 = vector.extract_strided_slice %60 {offsets = [2, 0], sizes = [16, 16], strides = [1, 1]} : vector<18x18xf32> to vector<16x16xf32>
    %c15 = arith.constant 15 : index
    %128 = memref.load %arg6[%c15] : memref<18xf32, #tpu.memory_space<smem>>
    %129 = vector.broadcast %128 : f32 to vector<16x16xf32>
    %130 = arith.mulf %127, %129 : vector<16x16xf32>
    %131 = arith.addf %126, %130 : vector<16x16xf32>
    %132 = vector.extract_strided_slice %56 {offsets = [2, 1], sizes = [16, 16], strides = [1, 1]} : vector<18x18xf32> to vector<16x16xf32>
    %c7 = arith.constant 7 : index
    %133 = memref.load %arg6[%c7] : memref<18xf32, #tpu.memory_space<smem>>
    %134 = vector.broadcast %133 : f32 to vector<16x16xf32>
    %135 = arith.mulf %132, %134 : vector<16x16xf32>
    %136 = arith.addf %131, %135 : vector<16x16xf32>
    %137 = vector.extract_strided_slice %60 {offsets = [2, 1], sizes = [16, 16], strides = [1, 1]} : vector<18x18xf32> to vector<16x16xf32>
    %c16 = arith.constant 16 : index
    %138 = memref.load %arg6[%c16] : memref<18xf32, #tpu.memory_space<smem>>
    %139 = vector.broadcast %138 : f32 to vector<16x16xf32>
    %140 = arith.mulf %137, %139 : vector<16x16xf32>
    %141 = arith.addf %136, %140 : vector<16x16xf32>
    %142 = vector.extract_strided_slice %56 {offsets = [2, 2], sizes = [16, 16], strides = [1, 1]} : vector<18x18xf32> to vector<16x16xf32>
    %c8 = arith.constant 8 : index
    %143 = memref.load %arg6[%c8] : memref<18xf32, #tpu.memory_space<smem>>
    %144 = vector.broadcast %143 : f32 to vector<16x16xf32>
    %145 = arith.mulf %142, %144 : vector<16x16xf32>
    %146 = arith.addf %141, %145 : vector<16x16xf32>
    %147 = vector.extract_strided_slice %60 {offsets = [2, 2], sizes = [16, 16], strides = [1, 1]} : vector<18x18xf32> to vector<16x16xf32>
    %c17 = arith.constant 17 : index
    %148 = memref.load %arg6[%c17] : memref<18xf32, #tpu.memory_space<smem>>
    %149 = vector.broadcast %148 : f32 to vector<16x16xf32>
    %150 = arith.mulf %147, %149 : vector<16x16xf32>
    %151 = arith.addf %146, %150 : vector<16x16xf32>
    %c0_33 = arith.constant 0 : index
    %c0_34 = arith.constant 0 : index
    %c0_35 = arith.constant 0 : index
    %152 = vector.load %arg8[%c0_33, %c0_34, %c0_35] : memref<1x16x16xf32, #tpu.memory_space<vmem>>, vector<1x16x16xf32>
    %153 = vector.shape_cast %152 : vector<1x16x16xf32> to vector<16x16xf32>
    %154 = vector.shape_cast %151 : vector<16x16xf32> to vector<1x16x16xf32>
    tpu.vector_store %arg8[%c0_33, %c0_34, %c0_35], %154 {strides = array<i32>} : memref<1x16x16xf32, #tpu.memory_space<vmem>>, vector<1x16x16xf32>,
    %cst_36 = arith.constant dense<0.000000e+00> : vector<16xf32>
    %155 = vector.multi_reduction <add>, %151, %cst_36 [0] : vector<16x16xf32> to vector<16xf32>
    %156 = vector.shape_cast %155 : vector<16xf32> to vector<1x16xf32>
    %cst_37 = arith.constant dense<0.000000e+00> : vector<1xf32>
    %157 = vector.multi_reduction <add>, %156, %cst_37 [1] : vector<1x16xf32> to vector<1xf32>
    %158 = vector.shape_cast %157 : vector<1xf32> to vector<1x1xf32>
    %159 = arith.mulf %151, %151 : vector<16x16xf32>
    %cst_38 = arith.constant dense<0.000000e+00> : vector<16xf32>
    %160 = vector.multi_reduction <add>, %159, %cst_38 [0] : vector<16x16xf32> to vector<16xf32>
    %161 = vector.shape_cast %160 : vector<16xf32> to vector<1x16xf32>
    %cst_39 = arith.constant dense<0.000000e+00> : vector<1xf32>
    %162 = vector.multi_reduction <add>, %161, %cst_39 [1] : vector<1x16xf32> to vector<1xf32>
    %163 = vector.shape_cast %162 : vector<1xf32> to vector<1x1xf32>
    %164 = tpu.concatenate %158, %163 in 1 : vector<1x1xf32>, vector<1x1xf32> -> vector<1x2xf32>
    %c0_40 = arith.constant 0 : index
    %c0_41 = arith.constant 0 : index
    %c0_42 = arith.constant 0 : index
    %165 = vector.load %arg9[%c0_40, %c0_41, %c0_42] : memref<1x1x2xf32, #tpu.memory_space<vmem>>, vector<1x1x2xf32>
    %166 = vector.shape_cast %165 : vector<1x1x2xf32> to vector<1x2xf32>
    %167 = vector.shape_cast %164 : vector<1x2xf32> to vector<1x1x2xf32>
    tpu.vector_store %arg9[%c0_40, %c0_41, %c0_42], %167 {strides = array<i32>} : memref<1x1x2xf32, #tpu.memory_space<vmem>>, vector<1x1x2xf32>,
    return
  }
  func.func @transform_0(%arg0: i32) -> (i32, i32, i32, i32) {
    %c0_i32 = arith.constant 0 : i32
    %c0_i32_0 = arith.constant 0 : i32
    %c0_i32_1 = arith.constant 0 : i32
    %c0_i32_2 = arith.constant 0 : i32
    return %arg0, %c0_i32, %c0_i32_0, %c0_i32_1 : i32, i32, i32, i32
  }
  func.func @transform_1(%arg0: i32) -> (i32, i32) {
    %c0_i32 = arith.constant 0 : i32
    %c0_i32_0 = arith.constant 0 : i32
    %c0_i32_1 = arith.constant 0 : i32
    return %c0_i32, %c0_i32_0 : i32, i32
  }
  func.func @transform_2(%arg0: i32) -> (i32, i32) {
    %c0_i32 = arith.constant 0 : i32
    %c0_i32_0 = arith.constant 0 : i32
    %c0_i32_1 = arith.constant 0 : i32
    return %c0_i32, %c0_i32_0 : i32, i32
  }
  func.func @transform_3(%arg0: i32) -> (i32, i32) {
    %c0_i32 = arith.constant 0 : i32
    %c0_i32_0 = arith.constant 0 : i32
    %c0_i32_1 = arith.constant 0 : i32
    return %c0_i32, %c0_i32_0 : i32, i32
  }
  func.func @transform_4(%arg0: i32) -> (i32, i32) {
    %c0_i32 = arith.constant 0 : i32
    %c0_i32_0 = arith.constant 0 : i32
    %c0_i32_1 = arith.constant 0 : i32
    return %c0_i32, %c0_i32_0 : i32, i32
  }
  func.func @transform_5(%arg0: i32) -> i32 {
    %c0_i32 = arith.constant 0 : i32
    %c0_i32_0 = arith.constant 0 : i32
    return %c0_i32 : i32
  }
  func.func @transform_6(%arg0: i32) -> (i32, i32, i32) {
    %c0_i32 = arith.constant 0 : i32
    %c0_i32_0 = arith.constant 0 : i32
    %c0_i32_1 = arith.constant 0 : i32
    return %arg0, %c0_i32, %c0_i32_0 : i32, i32, i32
  }
  func.func @transform_7(%arg0: i32) -> (i32, i32, i32) {
    %c0_i32 = arith.constant 0 : i32
    %c0_i32_0 = arith.constant 0 : i32
    %c0_i32_1 = arith.constant 0 : i32
    return %arg0, %c0_i32, %c0_i32_0 : i32, i32, i32
  }
  func.func @transform_8(%arg0: i32) -> (i32, i32, i32) {
    %c0_i32 = arith.constant 0 : i32
    %c0_i32_0 = arith.constant 0 : i32
    %c0_i32_1 = arith.constant 0 : i32
    return %arg0, %c0_i32, %c0_i32_0 : i32, i32, i32
  }
}

module attributes {stable_mosaic.version = 11 : i64} {
  func.func @_apply_kernel(%arg0: i32, %arg1: i32, %arg2: memref<1x16x16x16xf32, #tpu.memory_space<vmem>>, %arg3: memref<1x1x16xf32, #tpu.memory_space<vmem>>, %arg4: memref<1x16x16xf32, #tpu.memory_space<vmem>>, %arg5: memref<2xf32, #tpu.memory_space<smem>>, %arg6: memref<1x16x16x16xf32, #tpu.memory_space<vmem>>) attributes {dimension_semantics = [#tpu.dimension_semantics<parallel>, #tpu.dimension_semantics<parallel>], iteration_bounds = array<i64: 2, 1>, scalar_prefetch = 0 : i64, scratch_operands = 0 : i64, tpu.core_type = #tpu.core_type<tc>, window_params = [{transform_indices = @transform_0, window_bounds = array<i64: 1, 16, 16, 16>}, {transform_indices = @transform_1, window_bounds = array<i64: 1, 1, 16>}, {transform_indices = @transform_2, window_bounds = array<i64: 1, 16, 16>}, {transform_indices = @transform_3, window_bounds = array<i64: 2>}, {transform_indices = @transform_4, window_bounds = array<i64: 1, 16, 16, 16>}]} {
    %c0 = arith.constant 0 : index
    %0 = memref.load %arg5[%c0] : memref<2xf32, #tpu.memory_space<smem>>
    %c1 = arith.constant 1 : index
    %1 = memref.load %arg5[%c1] : memref<2xf32, #tpu.memory_space<smem>>
    %c0_0 = arith.constant 0 : index
    %c0_1 = arith.constant 0 : index
    %c0_2 = arith.constant 0 : index
    %2 = vector.load %arg4[%c0_0, %c0_1, %c0_2] : memref<1x16x16xf32, #tpu.memory_space<vmem>>, vector<1x16x16xf32>
    %3 = vector.broadcast %0 : f32 to vector<1x16x16xf32>
    %4 = arith.mulf %2, %3 : vector<1x16x16xf32>
    %5 = vector.broadcast %1 : f32 to vector<1x16x16xf32>
    %6 = arith.addf %4, %5 : vector<1x16x16xf32>
    %cst = arith.constant 0.000000e+00 : f32
    %7 = vector.broadcast %cst : f32 to vector<1x16x16xf32>
    %8 = arith.subf %7, %6 : vector<1x16x16xf32>
    %9 = math.exp %8 : vector<1x16x16xf32>
    %cst_3 = arith.constant 1.000000e+00 : f32
    %10 = vector.broadcast %cst_3 : f32 to vector<1x16x16xf32>
    %11 = arith.addf %10, %9 : vector<1x16x16xf32>
    %12 = tpu.reciprocal %11 : vector<1x16x16xf32> -> vector<1x16x16xf32>
    %c0_4 = arith.constant 0 : index
    %c0_5 = arith.constant 0 : index
    %c0_6 = arith.constant 0 : index
    %c0_7 = arith.constant 0 : index
    %13 = vector.load %arg2[%c0_4, %c0_5, %c0_6, %c0_7] : memref<1x16x16x16xf32, #tpu.memory_space<vmem>>, vector<1x16x16x16xf32>
    %c0_8 = arith.constant 0 : index
    %c0_9 = arith.constant 0 : index
    %c0_10 = arith.constant 0 : index
    %14 = vector.load %arg3[%c0_8, %c0_9, %c0_10] : memref<1x1x16xf32, #tpu.memory_space<vmem>>, vector<1x1x16xf32>
    %15 = vector.shape_cast %14 : vector<1x1x16xf32> to vector<1x1x1x16xf32>
    %16 = vector.broadcast %15 : vector<1x1x1x16xf32> to vector<1x16x16x16xf32>
    %17 = arith.mulf %13, %16 : vector<1x16x16x16xf32>
    %18 = vector.shape_cast %12 : vector<1x16x16xf32> to vector<1x16x16x1xf32>
    %19 = vector.broadcast %18 : vector<1x16x16x1xf32> to vector<1x16x16x16xf32>
    %20 = arith.mulf %17, %19 : vector<1x16x16x16xf32>
    %c0_11 = arith.constant 0 : index
    %c0_12 = arith.constant 0 : index
    %c0_13 = arith.constant 0 : index
    %c0_14 = arith.constant 0 : index
    %21 = vector.load %arg6[%c0_11, %c0_12, %c0_13, %c0_14] : memref<1x16x16x16xf32, #tpu.memory_space<vmem>>, vector<1x16x16x16xf32>
    tpu.vector_store %arg6[%c0_11, %c0_12, %c0_13, %c0_14], %20 {strides = array<i32>} : memref<1x16x16x16xf32, #tpu.memory_space<vmem>>, vector<1x16x16x16xf32>,
    return
  }
  func.func @transform_0(%arg0: i32, %arg1: i32) -> (i32, i32, i32, i32) {
    %c0_i32 = arith.constant 0 : i32
    %c0_i32_0 = arith.constant 0 : i32
    %c0_i32_1 = arith.constant 0 : i32
    return %arg0, %arg1, %c0_i32, %c0_i32_0 : i32, i32, i32, i32
  }
  func.func @transform_1(%arg0: i32, %arg1: i32) -> (i32, i32, i32) {
    %c0_i32 = arith.constant 0 : i32
    %c0_i32_0 = arith.constant 0 : i32
    %c0_i32_1 = arith.constant 0 : i32
    return %arg0, %c0_i32, %c0_i32_0 : i32, i32, i32
  }
  func.func @transform_2(%arg0: i32, %arg1: i32) -> (i32, i32, i32) {
    %c0_i32 = arith.constant 0 : i32
    %c0_i32_0 = arith.constant 0 : i32
    return %arg0, %arg1, %c0_i32 : i32, i32, i32
  }
  func.func @transform_3(%arg0: i32, %arg1: i32) -> i32 {
    %c0_i32 = arith.constant 0 : i32
    %c0_i32_0 = arith.constant 0 : i32
    return %c0_i32 : i32
  }
  func.func @transform_4(%arg0: i32, %arg1: i32) -> (i32, i32, i32, i32) {
    %c0_i32 = arith.constant 0 : i32
    %c0_i32_0 = arith.constant 0 : i32
    %c0_i32_1 = arith.constant 0 : i32
    return %arg0, %arg1, %c0_i32, %c0_i32_0 : i32, i32, i32, i32
  }
}

</mosaic_0001>

<bundles_post_ra>
// kernel: cbam_forward.3
= control target key start
LH: loop header
LB: loop body
LE: loop exit
PB: predicated region body
PF: predicated region fallthrough
CT: control target
= control target key end

     0   :  { %9 = vsyncpa [#allocation3], 0  ;;  %s978_s15 = smov 0   ;;  %s980_s16 = smov 0   ;;  %s1291_s0 = inlined_call_operand.vmem [shape: f32[2,16,16,16], index: 0, kind: input, shape index: {}, may-alias: {0,4}]   ;;  %s1292_s1 = inlined_call_operand.vmem [shape: f32[2,1,16], index: 1, kind: input, shape index: {}]   ;;  %s1293_s2 = inlined_call_operand.vmem [shape: f32[2,16,16], index: 2, kind: input, shape index: {}]   ;;  %s1294_s3 = inlined_call_operand.vmem [shape: f32[2], index: 3, kind: input, shape index: {}]   ;;  %s1295_s4 = inlined_call_operand.vmem [shape: f32[2,16,16,16], index: 4, kind: output, shape index: {}, may-alias: {0,4}]  }
   0x1   :  { %s982_s17 = smov 0  }
   0x2 LB: > { %s828_s18 = sadd.s32 4294967295, %s950_s17   ;;  %s27_s19 = sadd.s32 1, %s946_s16  ;;  %s950_s17 = sphi %s982_s17, %s15_s17   ;;  %s946_s16 = sphi %s980_s16, %s1297_s16   ;;  %s942_s15 = sphi %s978_s15, %s1296_s15  }
   0x3   : > { %p29_p0 = scmp.ge.s32.totalorder %s27_s19, 2  ;;  %p830_p1 = scmp.ge.s32.totalorder %s950_s17, 1 }
   0x4   : > { %p163_p2 = scmp.lt.s32.totalorder %s950_s17, 3  ;;  %p855_p4 = scmp.eq.s32.totalorder %s828_s18, 0 }
   0x5   : > { %s1299_s19 = smov (%p29_p0, %s27_s19), 0  ;;  %s175_s22 = sshll.u32 %s1294_s3, 4  ;;  %s176_s22 = int_to_ptr.vmem [resolvable:$true] %s175_s22 }
   0x6   : > { %p164_p3 = pnand %p830_p1, %p163_p2  ;;  %s952_s23 = smov [#allocation2]  }
   0x8   : > { %p851_p5 = pneg %p164_p3  ;;  %221 = sbr.rel (%p164_p3) target bundleno = 329 (0x149), region = 36 }
   0xa   : > { %p852_p6 = pnand %p855_p4, %p851_p5 }
   0xc   : > { %854 = dma.vmem_to_smem (!%p852_p6), %s176_s22, 16, %s952_s23, [#allocation3]  }
   0xd   : > { %937 = dma.done.wait (%p855_p4), [#allocation3], 16  }
   0xe   : > { %939 = vsyncadd (%p855_p4), [#allocation3], 4294967280 }
   0xf   : > { %228 = sfence }
  0x10   : > { %v421_v0 = vlaneseq  ;;  %p272_p7 = scmp.lt.s32.totalorder %s942_s15, 1  ;;  %s1000_s24 = sld [smem:[#allocation2]]  ;;  %vm660_vm8 = vcmask 130048  }
  0x11   : > { %s1002_s25 = sld [smem:[#allocation2 + $0x1]] }
  0x12   : > { %v1004_v1 = vshrl.u32 %v421_v0, 7  ;;  %s1301_s15 = smov (!%p272_p7, %s942_s15), 1 }
  0x13   : > { %s845_s26 = sshll.u32 %s1301_s15, 4  ;;  %s284_s6 = scalar_lea.vmem %s1292_s1, %s1301_s15 }
  0x14   : > { %883 = vset.pattern.permute.xlu1 %v1004_v1  ;;  %885 = vset.pattern.permute.xlu2 %v1004_v1  ;;  %s1014_s29 = scalar_lea.vmem %s1293_s2, %s845_s26  ;;  %v1020_v8 = vadd.s32 8, %v1004_v1  ;;  %s844_s7 = sshll.u32 %s1301_s15, 8  ;;  %v1057_v51 = vld [vmem:[%s284_s6] ss:$0 sm:$0xff] }
  0x15   : > { %v308_v2 = vld [vmem:[%s1014_s29] sm:$0xff]  ;;  %v309_v24 = vld [vmem:[%s1014_s29 + $0x8] sm:$0xff]  ;;  %s1050_s10 = scalar_lea.vmem %s1291_s0, %s844_s7  ;;  %s1141_s18 = scalar_lea.vmem %s1295_s4, %s844_s7 }
  0x16   : > { %v310_v3 = vstv %s1000_s24  ;;  %882 = vset.pattern.permute.xlu0 %v1020_v8  ;;  %v356_v53 = vld [vmem:[%s1050_s10 + $0x20] sm:$0xff]  ;;  %v354_v56 = vld [vmem:[%s1050_s10 + $0x10] sm:$0xff]  ;;  %v355_v57 = vld [vmem:[%s1050_s10 + $0x18] sm:$0xff] }
  0x17   : > { %v311_v4 = vmul.f32 %v310_v3, %v308_v2  ;;  %v313_v5 = vstv %s1002_s25  ;;  %v312_v25 = vmul.f32 %v310_v3, %v309_v24  ;;  %v392_v55 = vmul.f32 %v1057_v51, %v356_v53  ;;  %v357_v58 = vld [vmem:[%s1050_s10 + $0x28] sm:$0xff]  ;;  %v359_v59 = vld [vmem:[%s1050_s10 + $0x38] sm:$0xff]  ;;  %v1069_v60 = vld [vmem:[%s1050_s10 + $0x30] sm:$0xff] }
  0x18   : > { %v362_v61 = vld [vmem:[%s1050_s10 + $0x50] sm:$0xff]  ;;  %v1073_v62 = vld [vmem:[%s1050_s10 + $0x48] sm:$0xff]  ;;  %v364_v63 = vld [vmem:[%s1050_s10 + $0x60] sm:$0xff] }
  0x19   : > { %v314_v6 = vadd.f32 %v313_v5, %v311_v4  ;;  %v315_v26 = vadd.f32 %v313_v5, %v312_v25  ;;  %v1077_v0 = vld [vmem:[%s1050_s10 + $0x58] sm:$0xff]  ;;  %v1083_v3 = vld [vmem:[%s1050_s10 + $0x70] sm:$0xff]  ;;  %v1086_v4 = vld [vmem:[%s1050_s10 + $0x88] sm:$0xff] }
  0x1a   : > { %v1080_v2 = vld [vmem:[%s1050_s10 + $0x78] sm:$0xff]  ;;  %v1089_v5 = vld [vmem:[%s1050_s10 + $0x80] sm:$0xff]  ;;  %v1147_v24 = vld [vmem:[%s1050_s10 + $0xf0] sm:$0xff] }
  0x1b   : > { %v316_v7 = vsub.f32 0.0, %v314_v6  ;;  %v317_v27 = vsub.f32 0.0, %v315_v26  ;;  %v1092_v6 = vld [vmem:[%s1050_s10 + $0x8] sm:$0xff]  ;;  %v1150_v25 = vld [vmem:[%s1050_s10 + $0xf8] sm:$0xff]  ;;  %v393_v26 = vmul.f32 %v1057_v51, %v357_v58 }
  0x1d   : > { %v318_v9 = vmul.f32 1.442695, %v316_v7  ;;  %v320_v28 = vmul.f32 1.442695, %v317_v27  ;;  %v1095_v7 = vld [vmem:[%s1050_s10 + $0x68] sm:$0xff] }
  0x1f   : > { %901 = vpow2.f32 %v318_v9  ;;  %v1098_v9 = vld [vmem:[%s1050_s10 + $0xa0] sm:$0xff] }
  0x25   : > { %v902_v10 = vpop.eup %901 }
  0x26   : > { %v322_v11 = vadd.f32 1.0, %v902_v10  ;;  %v1101_v10 = vld [vmem:[%s1050_s10 + $0x98] sm:$0xff] }
  0x28   : > { %903 = vrcp.f32 %v322_v11  ;;  %v335_v14 = vand.u32 2147483648, %v322_v11  ;;  %vm329_vm0 = vweird.f32 %v322_v11  ;;  %v333_v16 = vand.u32 2147483647, %v322_v11 }
  0x29   : > { %905 = vpow2.f32 %v320_v28 }
  0x2a   : > { %v336_v18 = vor.u32 1.1754944e-38, %v335_v14  ;;  %vm334_vm3 = vcmp.eq.f32.partialorder %v333_v16, 8.507059e+37  ;;  %v1113_v14 = vld [vmem:[%s1050_s10] sm:$0xff]  ;;  %v1119_v16 = vld [vmem:[%s1050_s10 + $0xc8] sm:$0xff] }
  0x2e   : > { %v904_v12 = vpop.eup %903 }
  0x2f   : > { %v325_v13 = vmul.f32 %v904_v12, %v322_v11  ;;  %vm330_vm1 = vweird.f32 %v904_v12  ;;  %v906_v30 = vpop.eup %905  ;;  %v1104_v11 = vld [vmem:[%s1050_s10 + $0xb8] sm:$0xff] }
  0x30   : > { %vm331_vm2 = vmor %vm329_vm0, %vm330_vm1  ;;  %v323_v31 = vadd.f32 1.0, %v906_v30  ;;  %v390_v30 = vmul.f32 %v1057_v51, %v354_v56 }
  0x31   : > { %v326_v15 = vsub.f32 1.0, %v325_v13  ;;  %v1110_v13 = vld [vmem:[%s1050_s10 + $0xa8] sm:$0xff] }
  0x32   : > { %907 = vrcp.f32 %v323_v31  ;;  %vm343_vm4 = vweird.f32 %v323_v31  ;;  %v349_v40 = vand.u32 2147483648, %v323_v31  ;;  %v347_v42 = vand.u32 2147483647, %v323_v31 }
  0x33   : > { %v327_v17 = vmul.f32 %v904_v12, %v326_v15  ;;  %v1116_v15 = vld [vmem:[%s1050_s10 + $0x40] sm:$0xff] }
  0x34   : > { %v350_v43 = vor.u32 1.1754944e-38, %v349_v40  ;;  %vm348_vm7 = vcmp.eq.f32.partialorder %v347_v42, 8.507059e+37 }
  0x35   : > { %v328_v19 = vadd.f32 %v904_v12, %v327_v17  ;;  %v1122_v17 = vld [vmem:[%s1050_s10 + $0xc0] sm:$0xff] }
  0x37   : > { %v332_v20 = vsel %vm331_vm2, %v904_v12, %v328_v19  ;;  %v1107_v12 = vld [vmem:[%s1050_s10 + $0xb0] sm:$0xff] }
  0x38   : > { %v337_v21 = vsel %vm334_vm3, %v336_v18, %v332_v20  ;;  %v908_v32 = vpop.eup %907  ;;  %v1125_v18 = vld [vmem:[%s1050_s10 + $0x90] sm:$0xff]  ;;  %v1128_v20 = vld [vmem:[%s1050_s10 + $0xd8] sm:$0xff] }
  0x39   : > { %v433_v22 = vperm.slane %v337_v21, 1  ;;  %v446_v23 = vperm.slane %v337_v21, 2  ;;  %v459_v29 = vperm.slane %v337_v21, 3  ;;  %v339_v33 = vmul.f32 %v908_v32, %v323_v31 }
  0x3a   : > { %v485_v34 = vperm.slane %v337_v21, 5  ;;  %v420_v35 = vperm.slane %v337_v21, 0  ;;  %v472_v38 = vperm.slane %v337_v21, 4  ;;  %v498_v39 = vperm.slane %v337_v21, 6 }
  0x3b   : > { %438 = vperm.xlu1 %883, %v433_v22   ;;  %451 = vperm.xlu2 %885, %v446_v23   ;;  %v340_v36 = vsub.f32 1.0, %v339_v33  ;;  %vm344_vm5 = vweird.f32 %v908_v32  ;;  %v511_v47 = vperm.slane %v337_v21, 7  ;;  %v1131_v21 = vld [vmem:[%s1050_s10 + $0xd0] sm:$0xff]  ;;  %v395_v31 = vmul.f32 %v1057_v51, %v359_v59 }
  0x3c   : > { %431 = vperm.xlu0 %882, %v420_v35   ;;  %vm345_vm6 = vmor %vm343_vm4, %vm344_vm5  ;;  %v389_v59 = vmul.f32 %v1057_v51, %v1092_v6  ;;  %v408_v6 = vmul.f32 %v1057_v51, %v1098_v9  ;;  %v410_v9 = vmul.f32 %v1057_v51, %v1107_v12  ;;  %v396_v12 = vmul.f32 %v1057_v51, %v1116_v15 }
  0x3d   : > { %v341_v37 = vmul.f32 %v908_v32, %v340_v36  ;;  %v406_v15 = vmul.f32 %v1057_v51, %v1125_v18 }
  0x3f   : > { %v342_v41 = vadd.f32 %v908_v32, %v341_v37  ;;  %v391_v37 = vmul.f32 %v1057_v51, %v355_v57 }
  0x41   : > { %v346_v44 = vsel %vm345_vm6, %v908_v32, %v342_v41 }
  0x42   : > { %v1033_v45 = vsel %vm348_vm7, %v350_v43, %v346_v44  ;;  %v400_v44 = vmul.f32 %v1057_v51, %v364_v63 }
  0x43   : > { %884 = vset.pattern.permute.xlu1 %v1020_v8  ;;  %886 = vset.pattern.permute.xlu2 %v1020_v8  ;;  %v563_v46 = vperm.slane %v1033_v45, 3  ;;  %v524_v48 = vperm.slane %v1033_v45, 0  ;;  %v550_v49 = vperm.slane %v1033_v45, 2  ;;  %v537_v50 = vperm.slane %v1033_v45, 1 }
  0x44   : > { %509 = vperm.xlu0 %882, %v498_v39   ;;  %v602_v52 = vperm.slane %v1033_v45, 6  ;;  %v589_v36 = vperm.slane %v1033_v45, 5  ;;  %v615_v43 = vperm.slane %v1033_v45, 7 }
  0x4b   : > { %444 = vperm.xlu1 %884, %v433_v22   ;;  %457 = vperm.xlu2 %886, %v446_v23   ;;  %v1134_v22 = vld [vmem:[%s1050_s10 + $0xe0] sm:$0xff]  ;;  %v1144_v23 = vld [vmem:[%s1050_s10 + $0xe8] sm:$0xff] }
  0x4c   : > { %574 = vperm.xlu0 %882, %v563_v46  }
  0x53   : > { %887 = vset.pattern.permute.xlu1 %v1004_v1  ;;  %470 = vperm.xlu2 %886, %v459_v29  }
  0x54   : > { %894 = vset.pattern.permute.xlu0 %v1004_v1 }
  0x5b   : > { %464 = vperm.xlu1 %887, %v459_v29   ;;  %889 = vset.pattern.permute.xlu2 %v1004_v1  ;;  %v576_v29 = vperm.slane %v1033_v45, 4  ;;  %v405_v45 = vmul.f32 %v1057_v51, %v1086_v4 }
  0x5c   : > { %425 = vperm.xlu0 %894, %v420_v35  }
  0x63   : > { %888 = vset.pattern.permute.xlu1 %v1020_v8  ;;  %490 = vperm.xlu2 %889, %v485_v34  }
  0x64   : > { %477 = vperm.xlu0 %894, %v472_v38  }
  0x6b   : > { %483 = vperm.xlu1 %888, %v472_v38   ;;  %503 = vperm.xlu2 %889, %v498_v39   ;;  %v398_v38 = vmul.f32 %v1057_v51, %v362_v61  ;;  %v399_v61 = vmul.f32 %v1057_v51, %v1077_v0  ;;  %v411_v0 = vmul.f32 %v1057_v51, %v1104_v11 }
  0x6c   : > { %542 = vperm.xlu0 %894, %v537_v50  }
  0x73   : > { %496 = vperm.xlu1 %888, %v485_v34   ;;  %891 = vset.pattern.permute.xlu2 %v1020_v8 }
  0x74   : > { %607 = vperm.xlu0 %894, %v602_v52  }
  0x7b   : > { %890 = vset.pattern.permute.xlu1 %v1004_v1  ;;  %522 = vperm.xlu2 %891, %v511_v47  }
  0x7c   : > { %899 = vset.pattern.permute.xlu0 %v1020_v8 }
  0x83   : > { %516 = vperm.xlu1 %890, %v511_v47   ;;  %535 = vperm.xlu2 %891, %v524_v48  }
  0x8b   : > { %529 = vperm.xlu1 %890, %v524_v48   ;;  %893 = vset.pattern.permute.xlu2 %v1004_v1 }
  0x93   : > { %892 = vset.pattern.permute.xlu1 %v1020_v8  ;;  %555 = vperm.xlu2 %893, %v550_v49  }
  0x95   : > { %v452_v54 = vpop.permute.xlu2 %451 }
  0x96   : > { %v632_v19 = vmul.f32 %v452_v54, %v392_v55  ;;  %v397_v54 = vmul.f32 %v1057_v51, %v1073_v62  ;;  %v401_v62 = vmul.f32 %v1057_v51, %v1095_v7 }
  0x98   : > { %665 = vst.msk [vmem:[%s1141_s18 + $0x20] sm:$0xff] %vm660_vm8, %v632_v19 }
  0x9b   : > { %548 = vperm.xlu1 %892, %v537_v50   ;;  %568 = vperm.xlu2 %893, %v563_v46  }
  0xa3   : > { %561 = vperm.xlu1 %892, %v550_v49   ;;  %896 = vset.pattern.permute.xlu2 %v1020_v8 }
  0xa5   : > { %v458_v27 = vpop.permute.xlu2 %457 }
  0xa6   : > { %v633_v28 = vmul.f32 %v458_v27, %v393_v26 }
  0xa8   : > { %666 = vst.msk [vmem:[%s1141_s18 + $0x28] sm:$0xff] %vm660_vm8, %v633_v28 }
  0xab   : > { %895 = vset.pattern.permute.xlu1 %v1004_v1  ;;  %587 = vperm.xlu2 %896, %v576_v29  }
  0xad   : > { %v439_v32 = vpop.permute.xlu1 %438  ;;  %v471_v33 = vpop.permute.xlu2 %470 }
  0xae   : > { %v630_v34 = vmul.f32 %v439_v32, %v390_v30  ;;  %v635_v35 = vmul.f32 %v471_v33, %v395_v31  ;;  %v432_v58 = vpop.permute.xlu0 %431 }
  0xb0   : > { %663 = vst.msk [vmem:[%s1141_s18 + $0x10] sm:$0xff] %vm660_vm8, %v630_v34  ;;  %v388_v34 = vmul.f32 %v1057_v51, %v1113_v14  ;;  %v413_v14 = vmul.f32 %v1057_v51, %v1119_v16  ;;  %v416_v16 = vmul.f32 %v1057_v51, %v1134_v22 }
  0xb1   : > { %668 = vst.msk [vmem:[%s1141_s18 + $0x38] sm:$0xff] %vm660_vm8, %v635_v35 }
  0xb3   : > { %581 = vperm.xlu1 %895, %v576_v29   ;;  %600 = vperm.xlu2 %896, %v589_v36   ;;  %v402_v29 = vmul.f32 %v1057_v51, %v1083_v3  ;;  %v404_v3 = vmul.f32 %v1057_v51, %v1089_v5 }
  0xb6   : > { %v510_v4 = vpop.permute.xlu0 %509 }
  0xb7   : > { %v641_v19 = vmul.f32 %v510_v4, %v401_v62 }
  0xb9   : > { %674 = vst.msk [vmem:[%s1141_s18 + $0x68] sm:$0xff] %vm660_vm8, %v641_v19 }
  0xbb   : > { %594 = vperm.xlu1 %895, %v589_v36   ;;  %898 = vset.pattern.permute.xlu2 %v1004_v1  ;;  %v394_v1 = vmul.f32 %v1057_v51, %v1069_v60  ;;  %v629_v60 = vmul.f32 %v432_v58, %v389_v59 }
  0xbd   : > { %v445_v39 = vpop.permute.xlu1 %444  ;;  %v491_v40 = vpop.permute.xlu2 %490  ;;  %662 = vst.msk [vmem:[%s1141_s18 + $0x8] sm:$0xff] %vm660_vm8, %v629_v60 }
  0xbe   : > { %v631_v41 = vmul.f32 %v445_v39, %v391_v37  ;;  %v638_v42 = vmul.f32 %v491_v40, %v398_v38  ;;  %v575_v28 = vpop.permute.xlu0 %574 }
  0xbf   : > { %v651_v7 = vmul.f32 %v575_v28, %v411_v0 }
  0xc0   : > { %664 = vst.msk [vmem:[%s1141_s18 + $0x18] sm:$0xff] %vm660_vm8, %v631_v41 }
  0xc1   : > { %671 = vst.msk [vmem:[%s1141_s18 + $0x50] sm:$0xff] %vm660_vm8, %v638_v42 }
  0xc2   : > { %684 = vst.msk [vmem:[%s1141_s18 + $0xb8] sm:$0xff] %vm660_vm8, %v651_v7 }
  0xc3   : > { %897 = vset.pattern.permute.xlu1 %v1020_v8  ;;  %620 = vperm.xlu2 %898, %v615_v43   ;;  %v403_v8 = vmul.f32 %v1057_v51, %v1080_v2 }
  0xc5   : > { %v504_v46 = vpop.permute.xlu2 %503 }
  0xc6   : > { %v640_v47 = vmul.f32 %v504_v46, %v400_v44  ;;  %v415_v44 = vmul.f32 %v1057_v51, %v1128_v20 }
  0xc8   : > { %673 = vst.msk [vmem:[%s1141_s18 + $0x60] sm:$0xff] %vm660_vm8, %v640_v47 }
  0xcb   : > { %613 = vperm.xlu1 %897, %v602_v52  }
  0xcd   : > { %v465_v48 = vpop.permute.xlu1 %464 }
  0xce   : > { %v634_v49 = vmul.f32 %v465_v48, %v394_v1  ;;  %v426_v33 = vpop.permute.xlu0 %425 }
  0xcf   : > { %v628_v35 = vmul.f32 %v426_v33, %v388_v34 }
  0xd0   : > { %667 = vst.msk [vmem:[%s1141_s18 + $0x30] sm:$0xff] %vm660_vm8, %v634_v49 }
  0xd1   : > { %661 = vst.msk [vmem:[%s1141_s18] sm:$0xff] %vm660_vm8, %v628_v35 }
  0xd3   : > { %626 = vperm.xlu1 %897, %v615_v43   ;;  %v407_v43 = vmul.f32 %v1057_v51, %v1101_v10  ;;  %v409_v10 = vmul.f32 %v1057_v51, %v1110_v13 }
  0xd5   : > { %v523_v50 = vpop.permute.xlu2 %522 }
  0xd6   : > { %v643_v53 = vmul.f32 %v523_v50, %v403_v8  ;;  %v478_v38 = vpop.permute.xlu0 %477  ;;  %v418_v50 = vmul.f32 %v1057_v51, %v1147_v24  ;;  %v417_v24 = vmul.f32 %v1057_v51, %v1144_v23 }
  0xd7   : > { %v636_v39 = vmul.f32 %v478_v38, %v396_v12 }
  0xd8   : > { %676 = vst.msk [vmem:[%s1141_s18 + $0x78] sm:$0xff] %vm660_vm8, %v643_v53 }
  0xd9   : > { %669 = vst.msk [vmem:[%s1141_s18 + $0x40] sm:$0xff] %vm660_vm8, %v636_v39 }
  0xdd   : > { %v484_v52 = vpop.permute.xlu1 %483  ;;  %v536_v55 = vpop.permute.xlu2 %535 }
  0xde   : > { %v637_v56 = vmul.f32 %v484_v52, %v397_v54  ;;  %v645_v57 = vmul.f32 %v536_v55, %v405_v45  ;;  %v543_v41 = vpop.permute.xlu0 %542  ;;  %v412_v54 = vmul.f32 %v1057_v51, %v1122_v17  ;;  %v414_v52 = vmul.f32 %v1057_v51, %v1131_v21 }
  0xdf   : > { %v646_v42 = vmul.f32 %v543_v41, %v406_v15  ;;  %v419_v17 = vmul.f32 %v1057_v51, %v1150_v25 }
  0xe0   : > { %670 = vst.msk [vmem:[%s1141_s18 + $0x48] sm:$0xff] %vm660_vm8, %v637_v56 }
  0xe1   : > { %678 = vst.msk [vmem:[%s1141_s18 + $0x88] sm:$0xff] %vm660_vm8, %v645_v57 }
  0xe2   : > { %679 = vst.msk [vmem:[%s1141_s18 + $0x90] sm:$0xff] %vm660_vm8, %v646_v42 }
  0xe5   : > { %v497_v63 = vpop.permute.xlu1 %496 }
  0xe6   : > { %v639_v2 = vmul.f32 %v497_v63, %v399_v61  ;;  %v608_v48 = vpop.permute.xlu0 %607 }
  0xe7   : > { %v656_v49 = vmul.f32 %v608_v48, %v416_v16 }
  0xe8   : > { %672 = vst.msk [vmem:[%s1141_s18 + $0x58] sm:$0xff] %vm660_vm8, %v639_v2 }
  0xe9   : > { %689 = vst.msk [vmem:[%s1141_s18 + $0xe0] sm:$0xff] %vm660_vm8, %v656_v49 }
  0xed   : > { %v556_v26 = vpop.permute.xlu2 %555 }
  0xee   : > { %v648_v27 = vmul.f32 %v556_v26, %v408_v6 }
  0xf0   : > { %681 = vst.msk [vmem:[%s1141_s18 + $0xa0] sm:$0xff] %vm660_vm8, %v648_v27 }
  0xf5   : > { %v517_v30 = vpop.permute.xlu1 %516  ;;  %v569_v11 = vpop.permute.xlu2 %568 }
  0xf6   : > { %v642_v31 = vmul.f32 %v517_v30, %v402_v29  ;;  %v650_v32 = vmul.f32 %v569_v11, %v410_v9 }
  0xf8   : > { %675 = vst.msk [vmem:[%s1141_s18 + $0x70] sm:$0xff] %vm660_vm8, %v642_v31 }
  0xf9   : > { %683 = vst.msk [vmem:[%s1141_s18 + $0xb0] sm:$0xff] %vm660_vm8, %v650_v32 }
  0xfd   : > { %v530_v36 = vpop.permute.xlu1 %529 }
  0xfe   : > { %v644_v37 = vmul.f32 %v530_v36, %v404_v3 }
 0x100   : > { %677 = vst.msk [vmem:[%s1141_s18 + $0x80] sm:$0xff] %vm660_vm8, %v644_v37 }
 0x105   : > { %v588_v40 = vpop.permute.xlu2 %587 }
 0x106   : > { %v653_v5 = vmul.f32 %v588_v40, %v413_v14 }
 0x108   : > { %686 = vst.msk [vmem:[%s1141_s18 + $0xc8] sm:$0xff] %vm660_vm8, %v653_v5 }
 0x10d   : > { %v549_v46 = vpop.permute.xlu1 %548  ;;  %v601_v47 = vpop.permute.xlu2 %600 }
 0x10e   : > { %v647_v18 = vmul.f32 %v549_v46, %v407_v43  ;;  %v655_v1 = vmul.f32 %v601_v47, %v415_v44 }
 0x110   : > { %680 = vst.msk [vmem:[%s1141_s18 + $0x98] sm:$0xff] %vm660_vm8, %v647_v18 }
 0x111   : > { %688 = vst.msk [vmem:[%s1141_s18 + $0xd8] sm:$0xff] %vm660_vm8, %v655_v1 }
 0x115   : > { %v562_v20 = vpop.permute.xlu1 %561 }
 0x116   : > { %v649_v22 = vmul.f32 %v562_v20, %v409_v10 }
 0x118   : > { %682 = vst.msk [vmem:[%s1141_s18 + $0xa8] sm:$0xff] %vm660_vm8, %v649_v22 }
 0x11d   : > { %v621_v8 = vpop.permute.xlu2 %620 }
 0x11e   : > { %v658_v53 = vmul.f32 %v621_v8, %v418_v50 }
 0x120   : > { %691 = vst.msk [vmem:[%s1141_s18 + $0xf0] sm:$0xff] %vm660_vm8, %v658_v53 }
 0x125   : > { %v582_v13 = vpop.permute.xlu1 %581 }
 0x126   : > { %v652_v45 = vmul.f32 %v582_v13, %v412_v54 }
 0x128   : > { %685 = vst.msk [vmem:[%s1141_s18 + $0xc0] sm:$0xff] %vm660_vm8, %v652_v45 }
 0x12d   : > { %v595_v55 = vpop.permute.xlu1 %594 }
 0x12e   : > { %v654_v56 = vmul.f32 %v595_v55, %v414_v52 }
 0x130   : > { %687 = vst.msk [vmem:[%s1141_s18 + $0xd0] sm:$0xff] %vm660_vm8, %v654_v56 }
 0x13d   : > { %v614_v57 = vpop.permute.xlu1 %613 }
 0x13e   : > { %v657_v58 = vmul.f32 %v614_v57, %v417_v24 }
 0x140   : > { %690 = vst.msk [vmem:[%s1141_s18 + $0xe8] sm:$0xff] %vm660_vm8, %v657_v58 }
 0x145   : > { %v627_v59 = vpop.permute.xlu1 %626 }
 0x146   : > { %v659_v60 = vmul.f32 %v627_v59, %v419_v17 }
 0x148   : > { %692 = vst.msk [vmem:[%s1141_s18 + $0xf8] sm:$0xff] %vm660_vm8, %v659_v60 }
 0x149 PF: > { %s15_s17 = sadd.s32 1, %s950_s17   ;;  %s1296_s15 = smov %s946_s16 }
 0x14a   : > { %p12_p8 = scmp.ge.s32.totalorder %s15_s17, 4   ;;  %s1297_s16 = smov %s1299_s19 }
 0x14c   :  { %14 = sbr.rel (!%p12_p8) target bundleno = 2 (0x2), region = 77 }
 0x151   :  { %725 = vsyncpa [#allocation3], 1 }
 0x152   :  { %727 = vsyncpa [#allocation3 + $0x1], 1 }

// kernel: cbam_forward.2
= control target key start
LH: loop header
LB: loop body
LE: loop exit
PB: predicated region body
PF: predicated region fallthrough
CT: control target
= control target key end

     0   :  { %14 = vsyncpa [#allocation3], 0  ;;  %s2097_s27 = smov 0   ;;  %s3072_s0 = inlined_call_operand.vmem [shape: f32[2,16,16,16], index: 0, kind: input, shape index: {}]   ;;  %s3073_s1 = inlined_call_operand.vmem [shape: f32[8,16], index: 1, kind: input, shape index: {}]   ;;  %s3074_s2 = inlined_call_operand.vmem [shape: f32[1,8], index: 2, kind: input, shape index: {}]   ;;  %s3075_s3 = inlined_call_operand.vmem [shape: f32[16,8], index: 3, kind: input, shape index: {}]   ;;  %s3076_s4 = inlined_call_operand.vmem [shape: f32[1,16], index: 4, kind: input, shape index: {}]   ;;  %s3077_s5 = inlined_call_operand.vmem [shape: f32[18], index: 5, kind: input, shape index: {}]   ;;  %s3078_s6 = inlined_call_operand.vmem [shape: f32[2,1,16], index: 6, kind: output, shape index: {0}]   ;;  %s3079_s7 = inlined_call_operand.vmem [shape: f32[2,16,16], index: 7, kind: output, shape index: {1}]   ;;  %s3080_s8 = inlined_call_operand.vmem [shape: f32[2,1,2], index: 8, kind: output, shape index: {2}]  }
   0x1 LB: > { %s1943_s28 = sadd.s32 4294967295, %s2045_s27   ;;  %p1945_p0 = scmp.ge.s32.totalorder %s2045_s27, 1  ;;  %s2045_s27 = sphi %s2097_s27, %s20_s27  }
   0x2   : > { %p234_p1 = scmp.lt.s32.totalorder %s2045_s27, 3  ;;  %s258_s9 = sshll.u32 %s3077_s5, 4  ;;  %s259_s9 = int_to_ptr.vmem [resolvable:$true] %s258_s9 }
   0x3   : > { %p1983_p3 = scmp.eq.s32.totalorder %s1943_s28, 0  ;;  %s2047_s10 = smov [#allocation2]  }
   0x4   : > { %p235_p2 = pnand %p1945_p0, %p234_p1 }
   0x6   : > { %p1979_p4 = pneg %p235_p2  ;;  %279 = sbr.rel (%p235_p2) target bundleno = 1349 (0x545), region = 44 }
   0x8   : > { %p1980_p5 = pnand %p1983_p3, %p1979_p4 }
   0xa   : > { %1982 = dma.vmem_to_smem (!%p1980_p5), %s259_s9, 16, %s2047_s10, [#allocation3]  }
   0xb   : > { %2040 = dma.done.wait (%p1983_p3), [#allocation3], 16  }
   0xc   : > { %2042 = vsyncadd (%p1983_p3), [#allocation3], 4294967280 }
   0xd   : > { %286 = sfence }
   0xe   : > { %v3081_v0 = vlaneseq  ;;  %p321_p6 = scmp.lt.s32.totalorder %s1943_s28, 1  ;;  %v2116_v2 = vld [vmem:[%s3075_s3] sm:$0xff]  ;;  %vm369_vm0 = vcmask 130048   ;;  %v2125_v3 = vld [vmem:[%s3075_s3 + $0x8] sm:$0xff]  ;;  %vm513_vm1 = vcmask 1040384   ;;  %vm870_vm2 = vcmask 1041409  }
   0xf   : > { %v569_v4 = vperm.slane %v2116_v2, 3  ;;  %v2005_v5 = vld [vmem:[%s3074_s2] ss:$0 sm:$0xff]  ;;  %v555_v6 = vperm.slane %v2116_v2, 1  ;;  %v548_v23 = vperm.slane %v2116_v2, 0  ;;  %v562_v24 = vperm.slane %v2116_v2, 2 }
  0x10   : > { %v2109_v1 = vshrl.u32 %v3081_v0, 7  ;;  %s3091_s28 = smov (!%p321_p6, %s1943_s28), 1  ;;  %v646_v29 = vperm.slane %v2125_v3, 6  ;;  %vm872_vm3 = vcmask 1042434   ;;  %vm874_vm4 = vcmask 1043459   ;;  %s2049_s30 = smov 1  }
  0x11   : > { %s1973_s13 = sshll.u32 %s3091_s28, 8  ;;  %vm876_vm5 = vcmask 1044484   ;;  %vm878_vm6 = vcmask 1045509   ;;  %vm880_vm7 = vcmask 1046534   ;;  %vm882_vm8 = vcmask 1047559   ;;  %s328_s29 = scalar_lea.vmem %s3078_s6, %s3091_s28 }
  0x12   : > { %2000 = vset.pattern.permute.xlu0 %v2109_v1  ;;  %1998 = vset.pattern.permute.xlu1 %v2109_v1  ;;  %s2130_s18 = scalar_lea.vmem %s3072_s0, %s1973_s13  ;;  %vm909_vm9 = vcmask 64512   ;;  %s2849_s9 = sld [smem:[#allocation2 + $0x1]] }
  0x13   : > { %1999 = vset.pattern.permute.xlu2 %v2109_v1  ;;  %v2138_v7 = vld [vmem:[%s2130_s18] sm:$0xff]  ;;  %v2141_v8 = vld [vmem:[%s2130_s18 + $0x8] sm:$0xff]  ;;  %v2144_v9 = vld [vmem:[%s2130_s18 + $0x10] sm:$0xff]  ;;  %s2050_s10 = smov 127   ;;  %s2873_s11 = sld [smem:[#allocation2]] }
  0x14   : > { %v2147_v10 = vld [vmem:[%s2130_s18 + $0x18] sm:$0xff]  ;;  %v2150_v11 = vld [vmem:[%s2130_s18 + $0x20] sm:$0xff]  ;;  %v2153_v12 = vld [vmem:[%s2130_s18 + $0x28] sm:$0xff]  ;;  %v370_v13 = vsel %vm369_vm0, %v2138_v7, 0.0  ;;  %v371_v14 = vsel %vm369_vm0, %v2144_v9, 0.0  ;;  %v401_v15 = vsel %vm369_vm0, %v2141_v8, 0.0 }
  0x15   : > { %v2162_v16 = vld [vmem:[%s2130_s18 + $0x30] sm:$0xff]  ;;  %v2165_v17 = vld [vmem:[%s2130_s18 + $0x38] sm:$0xff]  ;;  %v2168_v18 = vld [vmem:[%s2130_s18 + $0x40] sm:$0xff]  ;;  %v372_v19 = vadd.f32 %v371_v14, %v370_v13  ;;  %v373_v20 = vsel %vm369_vm0, %v2150_v11, 0.0  ;;  %v402_v21 = vsel %vm369_vm0, %v2147_v10, 0.0  ;;  %v404_v22 = vsel %vm369_vm0, %v2153_v12, 0.0 }
  0x16   : > { %v2179_v25 = vld [vmem:[%s2130_s18 + $0x48] sm:$0xff]  ;;  %v2182_v26 = vld [vmem:[%s2130_s18 + $0x50] sm:$0xff]  ;;  %v375_v27 = vsel %vm369_vm0, %v2162_v16, 0.0  ;;  %v403_v28 = vadd.f32 %v402_v21, %v401_v15  ;;  %v2189_v31 = vld [vmem:[%s2130_s18 + $0x58] sm:$0xff]  ;;  %v406_v35 = vsel %vm369_vm0, %v2165_v17, 0.0  ;;  %v377_v41 = vsel %vm369_vm0, %v2168_v18, 0.0 }
  0x17   : > { %v2192_v32 = vld [vmem:[%s2130_s18 + $0x60] sm:$0xff]  ;;  %v2195_v33 = vld [vmem:[%s2130_s18 + $0x70] sm:$0xff]  ;;  %v374_v34 = vadd.f32 %v373_v20, %v372_v19  ;;  %v2202_v38 = vld [vmem:[%s2130_s18 + $0x68] sm:$0xff]  ;;  %v379_v47 = vsel %vm369_vm0, %v2182_v26, 0.0  ;;  %v408_v48 = vsel %vm369_vm0, %v2179_v25, 0.0  ;;  %v410_v55 = vsel %vm369_vm0, %v2189_v31, 0.0 }
  0x18   : > { %3083 = vst [vmem:[#allocation5_spill] sm:$0xff] %v2195_v33  ;;  %v2205_v39 = vld [vmem:[%s2130_s18 + $0x78] sm:$0xff]  ;;  %v2208_v40 = vld [vmem:[%s2130_s18 + $0x80] sm:$0xff]  ;;  %v405_v42 = vadd.f32 %v404_v22, %v403_v28  ;;  %v2214_v44 = vld [vmem:[%s2130_s18 + $0x90] sm:$0xff]  ;;  %v381_v52 = vsel %vm369_vm0, %v2192_v32, 0.0  ;;  %v383_v53 = vsel %vm369_vm0, %v2195_v33, 0.0 }
  0x19   : > { %v2217_v45 = vld [vmem:[%s2130_s18 + $0xa0] sm:$0xff]  ;;  %v376_v46 = vadd.f32 %v375_v27, %v374_v34  ;;  %v2224_v49 = vld [vmem:[%s2130_s18 + $0x88] sm:$0xff]  ;;  %v2227_v50 = vld [vmem:[%s2130_s18 + $0x98] sm:$0xff]  ;;  %v385_v60 = vsel %vm369_vm0, %v2208_v40, 0.0  ;;  %v412_v61 = vsel %vm369_vm0, %v2202_v38, 0.0  ;;  %v414_v62 = vsel %vm369_vm0, %v2205_v39, 0.0 }
  0x1a   : > { %574 = vperm.xlu0 %2000, %v569_v4   ;;  %537 = vperm.xlu1 %1998, %v2005_v5   ;;  %v2230_v51 = vld [vmem:[%s2130_s18 + $0xb0] sm:$0xff]  ;;  %v407_v54 = vadd.f32 %v406_v35, %v405_v42  ;;  %v2239_v56 = vld [vmem:[%s2130_s18 + $0xa8] sm:$0xff]  ;;  %v2242_v57 = vld [vmem:[%s2130_s18 + $0xc0] sm:$0xff]  ;;  %v387_v5 = vsel %vm369_vm0, %v2214_v44, 0.0  ;;  %v416_v20 = vsel %vm369_vm0, %v2224_v49, 0.0  ;;  %v418_v21 = vsel %vm369_vm0, %v2227_v50, 0.0 }
  0x1b   : > { %560 = vperm.xlu2 %1999, %v555_v6   ;;  %v363_v58 = vld [vmem:[%s2130_s18 + $0xd0] sm:$0xff]  ;;  %v378_v59 = vadd.f32 %v377_v41, %v376_v46  ;;  %v2252_v63 = vld [vmem:[%s2130_s18 + $0xb8] sm:$0xff]  ;;  %v2255_v4 = vld [vmem:[%s2130_s18 + $0xe0] sm:$0xff]  ;;  %v389_v6 = vsel %vm369_vm0, %v2217_v45, 0.0  ;;  %v391_v13 = vsel %vm369_vm0, %v2230_v51, 0.0  ;;  %v2265_v19 = vsel %vm369_vm0, %v2242_v57, 0.0 }
  0x1c   : > { %v409_v14 = vadd.f32 %v408_v48, %v407_v54  ;;  %v2272_v22 = vld [vmem:[%s2130_s18 + $0xc8] sm:$0xff]  ;;  %v2275_v27 = vsel %vm369_vm0, %v363_v58, 0.0  ;;  %v2279_v28 = vsel %vm369_vm0, %v2255_v4, 0.0  ;;  %v420_v35 = vsel %vm369_vm0, %v2239_v56, 0.0  ;;  %v2284_v41 = vld [vmem:[%s2130_s18 + $0xf0] sm:$0xff]  ;;  %s2875_s12 = sld [smem:[#allocation2 + $0x9]] }
  0x1d   : > { %v380_v15 = vadd.f32 %v379_v47, %v378_v59  ;;  %v422_v46 = vsel %vm369_vm0, %v2252_v63, 0.0  ;;  %v442_v47 = vsel %vm369_vm0, %v2138_v7, -inf  ;;  %v443_v48 = vsel %vm369_vm0, %v2144_v9, -inf  ;;  %v2308_v43 = vld [vmem:[%s2130_s18 + $0xe8] sm:$0xff]  ;;  %s1959_s13 = sld [smem:[#allocation2 + $0x3]]  ;;  %s2051_s19 = smov 126  }
  0x1e   : > { %v411_v34 = vadd.f32 %v410_v55, %v409_v14  ;;  %v444_v55 = vsel %vm369_vm0, %v2150_v11, -inf  ;;  %v446_v59 = vsel %vm369_vm0, %v2162_v16, -inf  ;;  %v2301_v14 = vld [vmem:[%s2130_s18 + $0xd8] sm:$0xff]  ;;  %v424_v0 = vsel %vm369_vm0, %v2272_v22, 0.0  ;;  %s1965_s14 = sld [smem:[#allocation2 + $0x6]] }
  0x1f   : > { %v382_v42 = vadd.f32 %v381_v52, %v380_v15  ;;  %v448_v52 = vsel %vm369_vm0, %v2168_v18, -inf  ;;  %v2312_v37 = vsel %vm369_vm0, %v2284_v41, 0.0  ;;  %v428_v30 = vsel %vm369_vm0, %v2308_v43, 0.0  ;;  %s2891_s15 = sld [smem:[#allocation2 + $0x2]] }
  0x20   : > { %v413_v54 = vadd.f32 %v412_v61, %v411_v34  ;;  %v445_v61 = vmax.f32 %v442_v47, %v444_v55  ;;  %v447_v34 = vmax.f32 %v443_v48, %v446_v59  ;;  %v454_v48 = vsel %vm369_vm0, %v2195_v33, -inf  ;;  %s1961_s16 = sld [smem:[#allocation2 + $0x4]] }
  0x21   : > { %v384_v15 = vadd.f32 %v383_v53, %v382_v42  ;;  %v452_v53 = vsel %vm369_vm0, %v2192_v32, -inf  ;;  %v426_v55 = vsel %vm369_vm0, %v2301_v14, 0.0  ;;  %v456_v59 = vsel %vm369_vm0, %v2208_v40, -inf  ;;  %s2893_s17 = sld [smem:[#allocation2 + $0xa]] }
  0x22   : > { %651 = vperm.xlu0 %2000, %v646_v29   ;;  %553 = vperm.xlu1 %1998, %v548_v23   ;;  %v415_v29 = vadd.f32 %v414_v62, %v413_v54  ;;  %v450_v23 = vsel %vm369_vm0, %v2182_v26, -inf  ;;  %v449_v36 = vmax.f32 %v445_v61, %v448_v52  ;;  %v458_v62 = vsel %vm369_vm0, %v2214_v44, -inf  ;;  %s1966_s20 = sld [smem:[#allocation2 + $0xf]] }
  0x23   : > { %567 = vperm.xlu2 %1999, %v562_v24   ;;  %v386_v42 = vadd.f32 %v385_v60, %v384_v15  ;;  %v451_v47 = vmax.f32 %v447_v34, %v450_v23  ;;  %v460_v61 = vsel %vm369_vm0, %v2217_v45, -inf  ;;  %v464_v34 = vsel %vm369_vm0, %v2242_v57, -inf  ;;  %s2910_s21 = sld [smem:[#allocation2 + $0x7]] }
  0x24   : > { %v417_v24 = vadd.f32 %v416_v20, %v415_v29  ;;  %v453_v60 = vmax.f32 %v449_v36, %v452_v53  ;;  %v462_v20 = vsel %vm369_vm0, %v2230_v51, -inf  ;;  %v473_v36 = vsel %vm369_vm0, %v2141_v8, -inf  ;;  %s2912_s22 = sld [smem:[#allocation2 + $0x5]] }
  0x25   : > { %v388_v54 = vadd.f32 %v387_v5, %v386_v42  ;;  %v455_v52 = vmax.f32 %v451_v47, %v454_v48  ;;  %v466_v5 = vsel %vm369_vm0, %v363_v58, -inf  ;;  %v475_v45 = vsel %vm369_vm0, %v2153_v12, -inf  ;;  %s2916_s23 = sld [smem:[#allocation2 + $0xb]] }
  0x26   : > { %v419_v15 = vadd.f32 %v418_v21, %v417_v24  ;;  %v457_v23 = vmax.f32 %v453_v60, %v456_v59  ;;  %v474_v21 = vsel %vm369_vm0, %v2147_v10, -inf  ;;  %v3084_v53 = vperm.slane %v2116_v2, 4  ;;  %s1962_s24 = sld [smem:[#allocation2 + $0xd]] }
  0x27   : > { %v390_v29 = vadd.f32 %v389_v6, %v388_v54  ;;  %v459_v33 = vmax.f32 %v455_v52, %v458_v62  ;;  %v476_v24 = vmax.f32 %v473_v36, %v475_v45  ;;  %v3085_v58 = vperm.slane %v2116_v2, 5  ;;  %s1964_s25 = sld [smem:[#allocation2 + $0xe]] }
  0x28   : > { %v421_v42 = vadd.f32 %v420_v35, %v419_v15  ;;  %v461_v6 = vmax.f32 %v457_v23, %v460_v61  ;;  %v477_v59 = vsel %vm369_vm0, %v2165_v17, -inf  ;;  %v479_v62 = vsel %vm369_vm0, %v2179_v25, -inf  ;;  %v2355_v15 = vld [vmem:[%s2130_s18 + $0xf8] sm:$0xff]  ;;  %s1969_s26 = sld [smem:[#allocation2 + $0x8]] }
  0x29   : > { %v392_v47 = vadd.f32 %v391_v13, %v390_v29  ;;  %v463_v48 = vmax.f32 %v459_v33, %v462_v20  ;;  %v481_v54 = vsel %vm369_vm0, %v2189_v31, -inf  ;;  %v468_v33 = vsel %vm369_vm0, %v2255_v4, -inf }
  0x2a   : > { %581 = vperm.xlu1 %1998, %v3084_v53   ;;  %v423_v35 = vadd.f32 %v422_v46, %v421_v42  ;;  %v465_v52 = vmax.f32 %v461_v6, %v464_v34  ;;  %v478_v13 = vmax.f32 %v474_v21, %v477_v59  ;;  %v480_v46 = vmax.f32 %v476_v24, %v479_v62 }
  0x2b   : > { %588 = vperm.xlu2 %1999, %v3085_v58   ;;  %v394_v60 = vadd.f32 %v2265_v19, %v392_v47  ;;  %v483_v20 = vsel %vm369_vm0, %v2202_v38, -inf  ;;  %v485_v29 = vsel %vm369_vm0, %v2205_v39, -inf  ;;  %v467_v42 = vmax.f32 %v463_v48, %v466_v5 }
  0x2c   : > { %v425_v61 = vadd.f32 %v424_v0, %v423_v35  ;;  %v470_v19 = vsel %vm369_vm0, %v2284_v41, -inf  ;;  %v482_v34 = vmax.f32 %v478_v13, %v481_v54  ;;  %v484_v4 = vmax.f32 %v480_v46, %v483_v20 }
  0x2d   : > { %v396_v23 = vadd.f32 %v2275_v27, %v394_v60  ;;  %v487_v21 = vsel %vm369_vm0, %v2224_v49, -inf  ;;  %v489_v0 = vsel %vm369_vm0, %v2227_v50, -inf  ;;  %v430_v53 = vsel %vm369_vm0, %v2355_v15, 0.0 }
  0x2e   : > { %v427_v36 = vadd.f32 %v426_v55, %v425_v61  ;;  %v486_v47 = vmax.f32 %v482_v34, %v485_v29  ;;  %v491_v27 = vsel %vm369_vm0, %v2239_v56, -inf  ;;  %v469_v41 = vmax.f32 %v465_v52, %v468_v33 }
  0x2f   : > { %v398_v45 = vadd.f32 %v2279_v28, %v396_v23  ;;  %v488_v6 = vmax.f32 %v484_v4, %v487_v21  ;;  %v493_v55 = vsel %vm369_vm0, %v2252_v63, -inf  ;;  %v3086_v48 = vperm.slane %v2116_v2, 6 }
  0x30   : > { %v429_v5 = vadd.f32 %v428_v30, %v427_v36  ;;  %v471_v58 = vmax.f32 %v467_v42, %v470_v19  ;;  %v490_v28 = vmax.f32 %v486_v47, %v489_v0  ;;  %v495_v35 = vsel %vm369_vm0, %v2272_v22, -inf }
  0x31   : > { %v400_v24 = vadd.f32 %v2312_v37, %v398_v45  ;;  %v3087_v59 = vperm.slane %v2116_v2, 7  ;;  %v492_v30 = vmax.f32 %v488_v6, %v491_v27  ;;  %v497_v54 = vsel %vm369_vm0, %v2301_v14, -inf }
  0x32   : > { %595 = vperm.xlu1 %1998, %v3086_v48   ;;  %v431_v62 = vadd.f32 %v430_v53, %v429_v5  ;;  %v494_v52 = vmax.f32 %v490_v28, %v493_v55  ;;  %v499_v33 = vsel %vm369_vm0, %v2308_v43, -inf  ;;  %v501_v61 = vsel %vm369_vm0, %v2355_v15, -inf }
  0x33   : > { %602 = vperm.xlu2 %1999, %v3087_v59   ;;  %v432_v60 = vsel %vm369_vm0, %v400_v24, 0.0  ;;  %v496_v13 = vmax.f32 %v492_v30, %v495_v35  ;;  %v604_v2 = vperm.slane %v2125_v3, 0  ;;  %v472_v20 = vmax.f32 %v469_v41, %v471_v58  ;;  %v924_v59 = vld [vmem:[%s3076_s4] sm:$0x1] }
  0x34   : > { %v433_v37 = vsel %vm369_vm0, %v431_v62, 0.0  ;;  %v498_v29 = vmax.f32 %v494_v52, %v497_v54  ;;  %v611_v23 = vperm.slane %v2125_v3, 1  ;;  %v618_v45 = vperm.slane %v2125_v3, 2  ;;  %v517_v54 = vld [vmem:[%s3073_s1] sm:$0xff] }
  0x35   : > { %v434_v46 = vadd.f32 %v433_v37, %v432_v60  ;;  %v500_v14 = vmax.f32 %v496_v13, %v499_v33  ;;  %v504_v43 = vsel %vm369_vm0, %v472_v20, -inf  ;;  %v625_v47 = vperm.slane %v2125_v3, 3 }
  0x36   : > { %v502_v19 = vmax.f32 %v498_v29, %v501_v61  ;;  %v632_v24 = vperm.slane %v2125_v3, 4  ;;  %v639_v35 = vperm.slane %v2125_v3, 5  ;;  %v925_v60 = vmul.f32 2.0, %v924_v59 }
  0x37   : > { %v435_v42 = vrot.slane %v434_v46, 4  ;;  %v653_v13 = vperm.slane %v2125_v3, 7 }
  0x38   : > { %v503_v36 = vmax.f32 %v500_v14, %v502_v19 }
  0x39   : > { %v436_v34 = vadd.f32 %v435_v42, %v434_v46  ;;  %v2048_v42 = vmov 0  }
  0x3a   : > { %609 = vperm.xlu1 %1998, %v604_v2   ;;  %v505_v21 = vsel %vm369_vm0, %v503_v36, -inf  ;;  %v927_v2 = vperm.slane %v925_v60, 0 }
  0x3b   : > { %616 = vperm.xlu2 %1999, %v611_v23   ;;  %v437_v4 = vrot.slane %v436_v34, 2  ;;  %v506_v0 = vmax.f32 %v504_v43, %v505_v21  ;;  %v936_v23 = vadd.s32 8, %v2109_v1 }
  0x3d   : > { %v438_v53 = vadd.f32 %v437_v4, %v436_v34  ;;  %v507_v27 = vrot.slane %v506_v0, 4  ;;  %2001 = vset.pattern.permute.xlu0 %v936_v23 }
  0x3f   : > { %v439_v5 = vrot.slane %v438_v53, 1  ;;  %v508_v41 = vmax.f32 %v506_v0, %v507_v27 }
  0x41   : > { %v440_v6 = vadd.f32 %v439_v5, %v438_v53  ;;  %v509_v55 = vrot.slane %v508_v41, 2 }
  0x42   : > { %623 = vperm.xlu1 %1998, %v618_v45  }
  0x43   : > { %630 = vperm.xlu2 %1999, %v625_v47   ;;  %v510_v48 = vmax.f32 %v508_v41, %v509_v55  ;;  %v441_v58 = vmul.f32 0.00390625, %v440_v6 }
  0x45   : > { %v511_v28 = vrot.slane %v510_v48, 1 }
  0x47   : > { %v512_v62 = vmax.f32 %v510_v48, %v511_v28 }
  0x49   : > { %v514_v30 = vsel %vm513_vm1, %v441_v58, %v512_v62 }
  0x4a   : > { %637 = vperm.xlu1 %1998, %v632_v24   ;;  %v518_v52 = vperm.slane %v514_v30, 0  ;;  %v516_v33 = vrot.slane %v514_v30, 1 }
  0x4b   : > { %644 = vperm.xlu2 %1999, %v639_v35  }
  0x4c   : > { %v522_v37 = vmul.f32 %v518_v52, %v517_v54  ;;  %v519_v61 = vperm.slane %v516_v33, 0 }
  0x4e   : > { %v524_v46 = vsel %vm369_vm0, %v522_v37, 0.0  ;;  %v523_v20 = vmul.f32 %v519_v61, %v517_v54 }
  0x4f   : > { %525 = vadd.xlane.f32.xlu0 %v524_v46 }
  0x50   : > { %v527_v29 = vsel %vm369_vm0, %v523_v20, 0.0 }
  0x52   : > { %658 = vperm.xlu1 %1998, %v653_v13  }
  0x53   : > { %932 = vperm.xlu2 %1999, %v927_v2  }
  0x57   : > { %528 = vadd.xlane.f32.xlu0 %v527_v29 }
  0x5a   : > { %2004 = vset.pattern.permute.xlu1 %v2048_v42 }
  0x5b   : > { %2002 = vset.pattern.permute.xlu2 %v2048_v42 }
  0x6b   : > { %938 = vperm.xlu0 %2001, %v927_v2  }
  0x73   : > { %2003 = vset.pattern.permute.xlu0 %v2048_v42 }
  0x75   : > { %v561_v19 = vpop.permute.xlu2 %560 }
  0x7d   : > { %v568_v43 = vpop.permute.xlu2 %567 }
  0x85   : > { %v589_v0 = vpop.permute.xlu2 %588 }
  0x8c   : > { %v538_v14 = vpop.permute.xlu1 %537  ;;  %v575_v34 = vpop.permute.xlu0 %574 }
  0x8d   : > { %v603_v6 = vpop.permute.xlu2 %602 }
  0x94   : > { %v554_v3 = vpop.permute.xlu1 %553  ;;  %v2409_v4 = vpop.permute.xlu0 %651 }
  0x95   : > { %v617_v28 = vpop.permute.xlu2 %616 }
  0x9c   : > { %v582_v36 = vpop.permute.xlu1 %581 }
  0x9d   : > { %v631_v54 = vpop.permute.xlu2 %630 }
  0xa4   : > { %v596_v21 = vpop.permute.xlu1 %595 }
  0xa5   : > { %v645_v61 = vpop.permute.xlu2 %644 }
  0xac   : > { %v610_v1 = vpop.permute.xlu1 %609 }
  0xb4   : > { %v624_v58 = vpop.permute.xlu1 %623 }
  0xbc   : > { %v638_v30 = vpop.permute.xlu1 %637 }
  0xc2   : > { %v526_v45 = vpop.xlane.xlu0 %525 }
  0xc3   : > { %v540_v53 = vadd.f32 %v538_v14, %v526_v45 }
  0xc4   : > { %v659_v13 = vpop.permute.xlu1 %658 }
  0xc5   : > { %v542_v47 = vmax.f32 %v540_v53, 0.0 }
  0xc7   : > { %v678_v27 = vmul.f32 %v568_v43, %v542_v47  ;;  %v676_v5 = vmul.f32 %v554_v3, %v542_v47  ;;  %v677_v41 = vmul.f32 %v561_v19, %v542_v47  ;;  %v680_v55 = vmul.f32 %v582_v36, %v542_v47 }
  0xc8   : > { %v679_v48 = vmul.f32 %v575_v34, %v542_v47  ;;  %v682_v24 = vmul.f32 %v596_v21, %v542_v47  ;;  %v683_v35 = vmul.f32 %v603_v6, %v542_v47  ;;  %v681_v59 = vmul.f32 %v589_v0, %v542_v47 }
  0xc9   : > { %747 = vperm.xlu1 %2004, %v678_v27   ;;  %741 = vperm.xlu2 %2002, %v676_v5   ;;  %v685_v62 = vmul.f32 %v617_v28, %v542_v47  ;;  %v686_v60 = vmul.f32 %v624_v58, %v542_v47  ;;  %v684_v52 = vmul.f32 %v610_v1, %v542_v47 }
  0xca   : > { %744 = vperm.xlu0 %2003, %v677_v41   ;;  %v688_v33 = vmul.f32 %v638_v30, %v542_v47  ;;  %v529_v37 = vpop.xlane.xlu0 %528  ;;  %v689_v46 = vmul.f32 %v645_v61, %v542_v47  ;;  %v687_v20 = vmul.f32 %v631_v54, %v542_v47  ;;  %v691_v29 = vmul.f32 %v659_v13, %v542_v47 }
  0xcb   : > { %v541_v2 = vadd.f32 %v538_v14, %v529_v37  ;;  %v690_v42 = vmul.f32 %v2409_v4, %v542_v47 }
  0xcd   : > { %v543_v23 = vmax.f32 %v541_v2, 0.0 }
  0xcf   : > { %v692_v45 = vmul.f32 %v554_v3, %v543_v23  ;;  %v694_v53 = vmul.f32 %v568_v43, %v543_v23  ;;  %v693_v27 = vmul.f32 %v561_v19, %v543_v23  ;;  %v695_v5 = vmul.f32 %v575_v34, %v543_v23 }
  0xd0   : > { %v697_v41 = vmul.f32 %v589_v0, %v543_v23  ;;  %v696_v14 = vmul.f32 %v582_v36, %v543_v23  ;;  %v703_v47 = vmul.f32 %v631_v54, %v543_v23  ;;  %v702_v3 = vmul.f32 %v624_v58, %v543_v23 }
  0xd1   : > { %753 = vperm.xlu1 %2004, %v680_v55   ;;  %750 = vperm.xlu2 %2002, %v679_v48   ;;  %v698_v55 = vmul.f32 %v596_v21, %v543_v23  ;;  %v700_v48 = vmul.f32 %v610_v1, %v543_v23  ;;  %v704_v43 = vmul.f32 %v638_v30, %v543_v23  ;;  %v2413_v21 = vpop.permute.xlu2 %932 }
  0xd2   : > { %759 = vperm.xlu0 %2003, %v682_v24   ;;  %v699_v24 = vmul.f32 %v603_v6, %v543_v23  ;;  %v706_v19 = vmul.f32 %v2409_v4, %v543_v23  ;;  %v705_v34 = vmul.f32 %v645_v61, %v543_v23  ;;  %v707_v36 = vmul.f32 %v659_v13, %v543_v23 }
  0xd9   : > { %762 = vperm.xlu1 %2004, %v683_v35   ;;  %756 = vperm.xlu2 %2002, %v681_v59   ;;  %v701_v35 = vmul.f32 %v617_v28, %v543_v23  ;;  %v3088_v59 = vlaneseq }
  0xda   : > { %768 = vperm.xlu0 %2003, %v685_v62  }
  0xdb   : > { %v2418_v62 = vand.u32 127, %v3088_v59 }
  0xdd   : > { %v2415_v6 = vpop.permute.xlu0 %938 }
  0xe1   : > { %771 = vperm.xlu1 %2004, %v686_v60   ;;  %765 = vperm.xlu2 %2002, %v684_v52  }
  0xe2   : > { %777 = vperm.xlu0 %2003, %v688_v33  }
  0xe9   : > { %780 = vperm.xlu1 %2004, %v689_v46   ;;  %774 = vperm.xlu2 %2002, %v687_v20  }
  0xea   : > { %786 = vperm.xlu0 %2003, %v691_v29  }
  0xf1   : > { %783 = vperm.xlu2 %2002, %v690_v42   ;;  %789 = vperm.xlu1 %2004, %v692_v45  }
  0xf2   : > { %795 = vperm.xlu0 %2003, %v694_v53  }
  0xf9   : > { %792 = vperm.xlu2 %2002, %v693_v27   ;;  %798 = vperm.xlu1 %2004, %v695_v5  }
  0xfa   : > { %804 = vperm.xlu0 %2003, %v697_v41  }
 0x101   : > { %801 = vperm.xlu2 %2002, %v696_v14   ;;  %807 = vperm.xlu1 %2004, %v698_v55  }
 0x102   : > { %813 = vperm.xlu0 %2003, %v700_v48  }
 0x109   : > { %810 = vperm.xlu2 %2002, %v699_v24   ;;  %816 = vperm.xlu1 %2004, %v701_v35  }
 0x10a   : > { %822 = vperm.xlu0 %2003, %v703_v47  }
 0x111   : > { %819 = vperm.xlu2 %2002, %v702_v3   ;;  %825 = vperm.xlu1 %2004, %v704_v43  }
 0x112   : > { %831 = vperm.xlu0 %2003, %v706_v19  }
 0x119   : > { %828 = vperm.xlu2 %2002, %v705_v34   ;;  %834 = vperm.xlu1 %2004, %v707_v36  }
 0x123   : > { %v742_v0 = vpop.permute.xlu2 %741 }
 0x124   : > { %v838_v54 = vperm.slane %v742_v0, %v2418_v62 }
 0x12b   : > { %v751_v1 = vpop.permute.xlu2 %750 }
 0x12c   : > { %v841_v61 = vperm.slane %v751_v1, %v2418_v62 }
 0x133   : > { %v757_v28 = vpop.permute.xlu2 %756 }
 0x134   : > { %v843_v23 = vperm.slane %v757_v28, %v2418_v62 }
 0x13b   : > { %v748_v58 = vpop.permute.xlu1 %747  ;;  %v766_v52 = vpop.permute.xlu2 %765 }
 0x13c   : > { %v745_v30 = vpop.permute.xlu0 %744  ;;  %v840_v60 = vperm.slane %v748_v58, %v2418_v62  ;;  %v846_v3 = vperm.slane %v766_v52, %v2418_v62 }
 0x13d   : > { %v839_v4 = vperm.slane %v745_v30, %v2418_v62 }
 0x13f   : > { %v871_v33 = vsel %vm870_vm2, %v839_v4, %v838_v54 }
 0x140   : > { %v873_v37 = vsel %vm872_vm3, %v840_v60, %v871_v33 }
 0x141   : > { %v875_v20 = vsel %vm874_vm4, %v841_v61, %v873_v37 }
 0x143   : > { %v754_v13 = vpop.permute.xlu1 %753  ;;  %v775_v42 = vpop.permute.xlu2 %774 }
 0x144   : > { %v842_v2 = vperm.slane %v754_v13, %v2418_v62  ;;  %v760_v46 = vpop.permute.xlu0 %759  ;;  %v849_v0 = vperm.slane %v775_v42, %v2418_v62 }
 0x145   : > { %v844_v53 = vperm.slane %v760_v46, %v2418_v62 }
 0x146   : > { %v877_v29 = vsel %vm876_vm5, %v842_v2, %v875_v20 }
 0x147   : > { %v879_v45 = vsel %vm878_vm6, %v843_v23, %v877_v29 }
 0x148   : > { %v881_v14 = vsel %vm880_vm7, %v844_v53, %v879_v45 }
 0x14b   : > { %v763_v27 = vpop.permute.xlu1 %762  ;;  %v784_v35 = vpop.permute.xlu2 %783 }
 0x14c   : > { %v845_v5 = vperm.slane %v763_v27, %v2418_v62  ;;  %v769_v41 = vpop.permute.xlu0 %768  ;;  %v852_v4 = vperm.slane %v784_v35, %v2418_v62 }
 0x14d   : > { %v847_v24 = vperm.slane %v769_v41, %v2418_v62 }
 0x14e   : > { %v883_v55 = vsel %vm882_vm8, %v845_v5, %v881_v14 }
 0x14f   : > { %v910_v48 = vsel %vm909_vm9, %v883_v55, 0.0  ;;  %v884_v34 = vsel %vm870_vm2, %v847_v24, %v846_v3 }
 0x150   : > { %911 = vadd.xlane.f32.xlu2 %v910_v48 }
 0x153   : > { %v772_v47 = vpop.permute.xlu1 %771  ;;  %v793_v54 = vpop.permute.xlu2 %792 }
 0x154   : > { %v848_v43 = vperm.slane %v772_v47, %v2418_v62  ;;  %v778_v19 = vpop.permute.xlu0 %777  ;;  %v855_v23 = vperm.slane %v793_v54, %v2418_v62 }
 0x155   : > { %v850_v28 = vperm.slane %v778_v19, %v2418_v62 }
 0x156   : > { %v885_v36 = vsel %vm872_vm3, %v848_v43, %v884_v34 }
 0x157   : > { %v886_v1 = vsel %vm874_vm4, %v849_v0, %v885_v36 }
 0x158   : > { %v887_v60 = vsel %vm876_vm5, %v850_v28, %v886_v1 }
 0x15b   : > { %v781_v59 = vpop.permute.xlu1 %780  ;;  %v802_v20 = vpop.permute.xlu2 %801 }
 0x15c   : > { %v851_v58 = vperm.slane %v781_v59, %v2418_v62  ;;  %v787_v30 = vpop.permute.xlu0 %786  ;;  %v858_v55 = vperm.slane %v802_v20, %v2418_v62 }
 0x15d   : > { %v853_v33 = vperm.slane %v787_v30, %v2418_v62 }
 0x15e   : > { %v888_v52 = vsel %vm878_vm6, %v851_v58, %v887_v60 }
 0x15f   : > { %v889_v37 = vsel %vm880_vm7, %v852_v4, %v888_v52 }
 0x160   : > { %v890_v13 = vsel %vm882_vm8, %v853_v33, %v889_v37 }
 0x161   : > { %v913_v61 = vsel %vm909_vm9, %v890_v13, 0.0 }
 0x162   : > { %914 = vadd.xlane.f32.xlu0 %v913_v61 }
 0x163   : > { %v790_v2 = vpop.permute.xlu1 %789  ;;  %v811_v48 = vpop.permute.xlu2 %810 }
 0x164   : > { %v796_v46 = vpop.permute.xlu0 %795  ;;  %v854_v29 = vperm.slane %v790_v2, %v2418_v62  ;;  %v861_v19 = vperm.slane %v811_v48, %v2418_v62 }
 0x165   : > { %v856_v42 = vperm.slane %v796_v46, %v2418_v62 }
 0x166   : > { %v891_v45 = vsel %vm870_vm2, %v855_v23, %v854_v29 }
 0x167   : > { %v892_v41 = vsel %vm872_vm3, %v856_v42, %v891_v45 }
 0x16b   : > { %v799_v53 = vpop.permute.xlu1 %798  ;;  %v820_v28 = vpop.permute.xlu2 %819 }
 0x16c   : > { %v857_v27 = vperm.slane %v799_v53, %v2418_v62  ;;  %v805_v5 = vpop.permute.xlu0 %804  ;;  %v864_v60 = vperm.slane %v820_v28, %v2418_v62 }
 0x16d   : > { %v859_v35 = vperm.slane %v805_v5, %v2418_v62 }
 0x16e   : > { %v893_v14 = vsel %vm874_vm4, %v857_v27, %v892_v41 }
 0x16f   : > { %v894_v24 = vsel %vm876_vm5, %v858_v55, %v893_v14 }
 0x170   : > { %v895_v34 = vsel %vm878_vm6, %v859_v35, %v894_v24 }
 0x173   : > { %v808_v47 = vpop.permute.xlu1 %807  ;;  %v829_v61 = vpop.permute.xlu2 %828 }
 0x174   : > { %v860_v3 = vperm.slane %v808_v47, %v2418_v62  ;;  %v814_v43 = vpop.permute.xlu0 %813  ;;  %v867_v20 = vperm.slane %v829_v61, %v2418_v62 }
 0x175   : > { %v862_v30 = vperm.slane %v814_v43, %v2418_v62 }
 0x176   : > { %v896_v36 = vsel %vm880_vm7, %v860_v3, %v895_v34 }
 0x177   : > { %v897_v0 = vsel %vm882_vm8, %v861_v19, %v896_v36 }
 0x178   : > { %v916_v1 = vsel %vm909_vm9, %v897_v0, 0.0 }
 0x179   : > { %917 = vadd.xlane.f32.xlu1 %v916_v1 }
 0x17b   : > { %v817_v59 = vpop.permute.xlu1 %816 }
 0x17c   : > { %v863_v58 = vperm.slane %v817_v59, %v2418_v62  ;;  %v823_v4 = vpop.permute.xlu0 %822 }
 0x17d   : > { %v865_v37 = vperm.slane %v823_v4, %v2418_v62 }
 0x17e   : > { %v898_v54 = vsel %vm870_vm2, %v863_v58, %v862_v30 }
 0x17f   : > { %v899_v52 = vsel %vm872_vm3, %v864_v60, %v898_v54 }
 0x180   : > { %v900_v2 = vsel %vm874_vm4, %v865_v37, %v899_v52 }
 0x183   : > { %v826_v33 = vpop.permute.xlu1 %825 }
 0x184   : > { %v866_v13 = vperm.slane %v826_v33, %v2418_v62  ;;  %v832_v29 = vpop.permute.xlu0 %831 }
 0x185   : > { %v868_v42 = vperm.slane %v832_v29, %v2418_v62 }
 0x186   : > { %v901_v46 = vsel %vm876_vm5, %v866_v13, %v900_v2 }
 0x187   : > { %v902_v23 = vsel %vm878_vm6, %v867_v20, %v901_v46 }
 0x188   : > { %v903_v27 = vsel %vm880_vm7, %v868_v42, %v902_v23 }
 0x18b   : > { %v835_v45 = vpop.permute.xlu1 %834 }
 0x18c   : > { %v869_v53 = vperm.slane %v835_v45, %v2418_v62 }
 0x18e   : > { %v904_v5 = vsel %vm882_vm8, %v869_v53, %v903_v27 }
 0x18f   : > { %v919_v41 = vsel %vm909_vm9, %v904_v5, 0.0  ;;  %v2487_v5 = vadd.s32 4294967288, %v2418_v62 }
 0x190   : > { %920 = vadd.xlane.f32.xlu2 %v919_v41 }
 0x1c3   : > { %v912_v14 = vpop.xlane.xlu2 %911 }
 0x1d5   : > { %v915_v19 = vpop.xlane.xlu0 %914 }
 0x1ec   : > { %v918_v55 = vpop.xlane.xlu1 %917 }
 0x1ed   : > { %v922_v48 = vadd.f32 %v918_v55, %v912_v14 }
 0x1ef   : > { %v942_v24 = vadd.f32 %v2413_v21, %v922_v48 }
 0x1f1   : > { %v944_v35 = vsub.f32 0.0, %v942_v24 }
 0x1f3   : > { %v946_v47 = vmul.f32 1.442695, %v944_v35 }
 0x1f5   : > { %2006 = vpow2.f32 %v946_v47 }
 0x1fb   : > { %v2007_v3 = vpop.eup %2006 }
 0x1fc   : > { %v950_v43 = vadd.f32 1.0, %v2007_v3 }
 0x1fe   : > { %2008 = vrcp.f32 %v950_v43  ;;  %v963_v30 = vand.u32 2147483648, %v950_v43  ;;  %v961_v54 = vand.u32 2147483647, %v950_v43  ;;  %vm957_vm11 = vweird.f32 %v950_v43 }
 0x200   : > { %v964_v52 = vor.u32 1.1754944e-38, %v963_v30  ;;  %vm962_vm13 = vcmp.eq.f32.partialorder %v961_v54, 8.507059e+37 }
 0x203   : > { %v921_v34 = vpop.xlane.xlu2 %920 }
 0x204   : > { %v2009_v36 = vpop.eup %2008  ;;  %v923_v0 = vadd.f32 %v921_v34, %v915_v19 }
 0x205   : > { %v953_v1 = vmul.f32 %v2009_v36, %v950_v43  ;;  %vm958_vm10 = vweird.f32 %v2009_v36 }
 0x206   : > { %v943_v28 = vadd.f32 %v2415_v6, %v923_v0  ;;  %vm959_vm12 = vmor %vm957_vm11, %vm958_vm10  ;;  %vm991_vm11 = vcmask 130112  }
 0x207   : > { %v954_v59 = vsub.f32 1.0, %v953_v1 }
 0x208   : > { %v945_v58 = vsub.f32 0.0, %v943_v28 }
 0x209   : > { %v955_v4 = vmul.f32 %v2009_v36, %v954_v59 }
 0x20a   : > { %v948_v21 = vmul.f32 1.442695, %v945_v58 }
 0x20b   : > { %v956_v60 = vadd.f32 %v2009_v36, %v955_v4 }
 0x20c   : > { %2010 = vpow2.f32 %v948_v21 }
 0x20d   : > { %v960_v33 = vsel %vm959_vm12, %v2009_v36, %v956_v60  ;;  %vm994_vm12 = vcmask 122880  }
 0x20e   : > { %v965_v37 = vsel %vm962_vm13, %v964_v52, %v960_v33 }
 0x20f   : > { %983 = vperm.xlu1 %2004, %v965_v37  }
 0x212   : > { %v2011_v13 = vpop.eup %2010 }
 0x213   : > { %v951_v61 = vadd.f32 1.0, %v2011_v13 }
 0x215   : > { %2012 = vrcp.f32 %v951_v61  ;;  %v977_v20 = vand.u32 2147483648, %v951_v61  ;;  %v975_v23 = vand.u32 2147483647, %v951_v61  ;;  %vm971_vm15 = vweird.f32 %v951_v61 }
 0x217   : > { %v978_v45 = vor.u32 1.1754944e-38, %v977_v20  ;;  %vm976_vm10 = vcmp.eq.f32.partialorder %v975_v23, 8.507059e+37 }
 0x21b   : > { %v2013_v6 = vpop.eup %2012 }
 0x21c   : > { %v967_v2 = vmul.f32 %v2013_v6, %v951_v61  ;;  %vm972_vm14 = vweird.f32 %v2013_v6 }
 0x21d   : > { %vm973_vm9 = vmor %vm971_vm15, %vm972_vm14 }
 0x21e   : > { %v968_v46 = vsub.f32 1.0, %v967_v2 }
 0x220   : > { %v969_v29 = vmul.f32 %v2013_v6, %v968_v46 }
 0x222   : > { %v970_v42 = vadd.f32 %v2013_v6, %v969_v29  ;;  %v2014_v29 = vld [vmem:[%s2130_s18 + $0xa0] sm:$0xff] }
 0x224   : > { %v974_v53 = vsel %vm973_vm9, %v2013_v6, %v970_v42 }
 0x225   : > { %v979_v27 = vsel %vm976_vm10, %v978_v45, %v974_v53 }
 0x226   : > { %986 = vperm.xlu2 %2002, %v979_v27  }
 0x280   : > { %v987_v41 = vpop.permute.xlu2 %986 }
 0x281   : > { %v990_v14 = vperm.slane %v987_v41, %v2487_v5  ;;  %v984_v55 = vpop.permute.xlu1 %983 }
 0x282   : > { %v988_v48 = vperm.slane %v984_v55, %v2418_v62 }
 0x284   : > { %v2496_v24 = vsel %vm991_vm11, %v990_v14, %v988_v48  ;;  %v2015_v14 = vld [vmem:[%s2130_s18 + $0xd0] sm:$0xff] }
 0x285   : > { %995 = vst.msk [vmem:[%s328_s29] sm:$0x1] %vm994_vm12, %v2496_v24  ;;  %v2501_v35 = vmul.f32 %v2496_v24, %v2144_v9  ;;  %v2505_v47 = vmul.f32 %v2496_v24, %v2141_v8  ;;  %v2509_v3 = vmul.f32 %v2496_v24, %v2138_v7  ;;  %v2519_v8 = vmul.f32 %v2496_v24, %v2165_v17  ;;  %s1968_s29 = sld [smem:[#allocation2 + $0x10]] }
 0x286   : > { %v2523_v7 = vmul.f32 %v2496_v24, %v2150_v11  ;;  %v2527_v9 = vmul.f32 %v2496_v24, %v2147_v10  ;;  %v2537_v11 = vmul.f32 %v2496_v24, %v2182_v26  ;;  %v2541_v10 = vmul.f32 %v2496_v24, %v2162_v16 }
 0x287   : > { %v1041_v43 = vsel %vm369_vm0, %v2501_v35, -inf  ;;  %v1038_v19 = vsel %vm369_vm0, %v2505_v47, -inf  ;;  %v1035_v34 = vsel %vm369_vm0, %v2509_v3, -inf  ;;  %v1056_v36 = vsel %vm369_vm0, %v2519_v8, -inf }
 0x288   : > { %1042 = vmax.xlane.f32.xlu0 %v1041_v43  ;;  %1039 = vmax.xlane.f32.xlu2 %v1038_v19  ;;  %v1047_v0 = vsel %vm369_vm0, %v2523_v7, -inf  ;;  %v1044_v17 = vsel %vm369_vm0, %v2527_v9, -inf  ;;  %v2545_v1 = vmul.f32 %v2496_v24, %v2153_v12  ;;  %v1065_v28 = vsel %vm369_vm0, %v2537_v11, -inf }
 0x289   : > { %1036 = vmax.xlane.f32.xlu1 %v1035_v34  ;;  %v1053_v59 = vsel %vm369_vm0, %v2541_v10, -inf  ;;  %v2555_v16 = vmul.f32 %v2496_v24, %v2202_v38  ;;  %v2559_v12 = vmul.f32 %v2496_v24, %v2179_v25  ;;  %v2563_v58 = vmul.f32 %v2496_v24, %v2168_v18 }
 0x28a   : > { %v1050_v26 = vsel %vm369_vm0, %v2545_v1, -inf  ;;  %v1019_v25 = vmul.f32 %v2496_v24, %v2208_v40  ;;  %v2575_v54 = vmul.f32 %v2496_v24, %v2192_v32  ;;  %v2579_v18 = vmul.f32 %v2496_v24, %v2189_v31  ;;  %v3089_v31 = vld [vmem:[#allocation5_spill] sm:$0xff] }
 0x28b   : > { %v1074_v30 = vsel %vm369_vm0, %v2555_v16, -inf  ;;  %v1062_v4 = vsel %vm369_vm0, %v2559_v12, -inf  ;;  %v1059_v38 = vsel %vm369_vm0, %v2563_v58, -inf  ;;  %v2588_v40 = vmul.f32 %v2496_v24, %v2227_v50 }
 0x28c   : > { %v1083_v21 = vsel %vm369_vm0, %v1019_v25, -inf  ;;  %v1071_v60 = vsel %vm369_vm0, %v2575_v54, -inf  ;;  %v1068_v52 = vsel %vm369_vm0, %v2579_v18, -inf  ;;  %v1018_v32 = vmul.f32 %v2496_v24, %v2205_v39 }
 0x28d   : > { %v1017_v33 = vmul.f32 %v2496_v24, %v3089_v31  ;;  %v1092_v37 = vsel %vm369_vm0, %v2588_v40, -inf  ;;  %v2600_v50 = vmul.f32 %v2496_v24, %v2230_v51  ;;  %v1021_v39 = vmul.f32 %v2496_v24, %v2214_v44 }
 0x28e   : > { %v1080_v13 = vsel %vm369_vm0, %v1018_v32, -inf  ;;  %v1020_v6 = vmul.f32 %v2496_v24, %v2224_v49  ;;  %v2612_v51 = vmul.f32 %v2496_v24, %v2272_v22  ;;  %v1024_v44 = vmul.f32 %v2496_v24, %v2239_v56 }
 0x28f   : > { %v1077_v61 = vsel %vm369_vm0, %v1017_v33, -inf  ;;  %v1101_v2 = vsel %vm369_vm0, %v2600_v50, -inf  ;;  %v1089_v46 = vsel %vm369_vm0, %v1021_v39, -inf  ;;  %v1023_v49 = vmul.f32 %v2014_v29, %v2496_v24 }
 0x290   : > { %1057 = vmax.xlane.f32.xlu0 %v1056_v36  ;;  %1048 = vmax.xlane.f32.xlu2 %v1047_v0  ;;  %v1086_v20 = vsel %vm369_vm0, %v1020_v6, -inf  ;;  %v1110_v23 = vsel %vm369_vm0, %v2612_v51, -inf  ;;  %v1098_v42 = vsel %vm369_vm0, %v1024_v44, -inf  ;;  %v1027_v22 = vmul.f32 %v2496_v24, %v2242_v57 }
 0x291   : > { %1045 = vmax.xlane.f32.xlu1 %v1044_v17  ;;  %v1095_v45 = vsel %vm369_vm0, %v1023_v49, -inf  ;;  %v1026_v56 = vmul.f32 %v2496_v24, %v2252_v63  ;;  %v1134_v53 = vsel %vm369_vm0, %v2505_v47, 0.0  ;;  %v2632_v55 = vmul.f32 %v2015_v14, %v2496_v24 }
 0x292   : > { %v1107_v27 = vsel %vm369_vm0, %v1027_v22, -inf  ;;  %v1173_v48 = vsel %vm369_vm0, %v1017_v33, 0.0  ;;  %v1131_v57 = vsel %vm369_vm0, %v2509_v3, 0.0  ;;  %v1182_v47 = vsel %vm369_vm0, %v1020_v6, 0.0  ;;  %v2016_v33 = vld [vmem:[%s2130_s18 + $0xd8] sm:$0xff] }
 0x293   : > { %v1104_v41 = vsel %vm369_vm0, %v1026_v56, -inf  ;;  %v1113_v63 = vsel %vm369_vm0, %v2632_v55, -inf  ;;  %v1140_v43 = vsel %vm369_vm0, %v2527_v9, 0.0  ;;  %v1137_v19 = vsel %vm369_vm0, %v2501_v35, 0.0 }
 0x294   : > { %v1185_v34 = vsel %vm369_vm0, %v1021_v39, 0.0  ;;  %v1179_v3 = vsel %vm369_vm0, %v1019_v25, 0.0  ;;  %v1176_v36 = vsel %vm369_vm0, %v1018_v32, 0.0  ;;  %v1152_v0 = vsel %vm369_vm0, %v2519_v8, 0.0  ;;  %v2017_v39 = vld [vmem:[%s2130_s18 + $0xe0] sm:$0xff] }
 0x295   : > { %v1146_v9 = vsel %vm369_vm0, %v2545_v1, 0.0  ;;  %v1143_v35 = vsel %vm369_vm0, %v2523_v7, 0.0  ;;  %v1155_v17 = vsel %vm369_vm0, %v2563_v58, 0.0  ;;  %v1188_v8 = vsel %vm369_vm0, %v2588_v40, 0.0 }
 0x296   : > { %v1200_v1 = vsel %vm369_vm0, %v1026_v56, 0.0  ;;  %v1191_v7 = vsel %vm369_vm0, %v1023_v49, 0.0  ;;  %v1164_v40 = vsel %vm369_vm0, %v2579_v18, 0.0  ;;  %v1161_v32 = vsel %vm369_vm0, %v2537_v11, 0.0 }
 0x297   : > { %v1206_v18 = vsel %vm369_vm0, %v2612_v51, 0.0  ;;  %v1031_v6 = vmul.f32 %v2017_v39, %v2496_v24  ;;  %v1034_v49 = vmul.f32 %v2496_v24, %v2355_v15 }
 0x298   : > { %1066 = vmax.xlane.f32.xlu0 %v1065_v28  ;;  %1054 = vmax.xlane.f32.xlu2 %v1053_v59  ;;  %v1149_v28 = vsel %vm369_vm0, %v2541_v10, 0.0  ;;  %v1194_v59 = vsel %vm369_vm0, %v1024_v44, 0.0  ;;  %v1170_v44 = vsel %vm369_vm0, %v2555_v16, 0.0 }
 0x299   : > { %1051 = vmax.xlane.f32.xlu1 %v1050_v26  ;;  %v1119_v16 = vsel %vm369_vm0, %v1031_v6, -inf }
 0x2a0   : > { %1075 = vmax.xlane.f32.xlu0 %v1074_v30  ;;  %1063 = vmax.xlane.f32.xlu2 %v1062_v4  ;;  %v1203_v30 = vsel %vm369_vm0, %v1027_v22, 0.0  ;;  %v1197_v4 = vsel %vm369_vm0, %v2600_v50, 0.0  ;;  %v1128_v22 = vsel %vm369_vm0, %v1034_v49, -inf }
 0x2a1   : > { %1060 = vmax.xlane.f32.xlu1 %v1059_v38  ;;  %v1158_v38 = vsel %vm369_vm0, %v2559_v12, 0.0 }
 0x2a8   : > { %1084 = vmax.xlane.f32.xlu0 %v1083_v21  ;;  %1072 = vmax.xlane.f32.xlu2 %v1071_v60 }
 0x2a9   : > { %1069 = vmax.xlane.f32.xlu1 %v1068_v52  ;;  %v1167_v52 = vsel %vm369_vm0, %v2575_v54, 0.0 }
 0x2b0   : > { %1093 = vmax.xlane.f32.xlu0 %v1092_v37  ;;  %1081 = vmax.xlane.f32.xlu2 %v1080_v13  ;;  %v1030_v37 = vmul.f32 %v2016_v33, %v2496_v24 }
 0x2b1   : > { %1078 = vmax.xlane.f32.xlu1 %v1077_v61 }
 0x2b2   : > { %v1212_v61 = vsel %vm369_vm0, %v1030_v37, 0.0  ;;  %v1116_v54 = vsel %vm369_vm0, %v1030_v37, -inf }
 0x2b8   : > { %1102 = vmax.xlane.f32.xlu0 %v1101_v2  ;;  %1090 = vmax.xlane.f32.xlu2 %v1089_v46  ;;  %v1215_v46 = vsel %vm369_vm0, %v1031_v6, 0.0 }
 0x2b9   : > { %1087 = vmax.xlane.f32.xlu1 %v1086_v20  ;;  %v1209_v20 = vsel %vm369_vm0, %v2632_v55, 0.0 }
 0x2c0   : > { %1111 = vmax.xlane.f32.xlu0 %v1110_v23  ;;  %1099 = vmax.xlane.f32.xlu2 %v1098_v42  ;;  %v2018_v23 = vld [vmem:[%s2130_s18 + $0xe8] sm:$0xff] }
 0x2c1   : > { %1096 = vmax.xlane.f32.xlu1 %v1095_v45  ;;  %v1032_v42 = vmul.f32 %v2018_v23, %v2496_v24 }
 0x2c3   : > { %v1122_v56 = vsel %vm369_vm0, %v1032_v42, -inf }
 0x2c8   : > { %1135 = vadd.xlane.f32.xlu0 %v1134_v53  ;;  %1108 = vmax.xlane.f32.xlu2 %v1107_v27 }
 0x2c9   : > { %1105 = vmax.xlane.f32.xlu1 %v1104_v41 }
 0x2d0   : > { %1174 = vadd.xlane.f32.xlu0 %v1173_v48  ;;  %1132 = vadd.xlane.f32.xlu2 %v1131_v57 }
 0x2d1   : > { %1114 = vmax.xlane.f32.xlu1 %v1113_v63  ;;  %v2019_v63 = vld [vmem:[%s2130_s18 + $0xf0] sm:$0xff]  ;;  %s1960_s18 = sld [smem:[#allocation2 + $0xc]] }
 0x2d8   : > { %1183 = vadd.xlane.f32.xlu0 %v1182_v47  ;;  %1141 = vadd.xlane.f32.xlu2 %v1140_v43  ;;  %v1033_v47 = vmul.f32 %v2019_v63, %v2496_v24 }
 0x2d9   : > { %1138 = vadd.xlane.f32.xlu1 %v1137_v19 }
 0x2da   : > { %v1221_v39 = vsel %vm369_vm0, %v1033_v47, 0.0 }
 0x2e0   : > { %1186 = vadd.xlane.f32.xlu0 %v1185_v34  ;;  %1180 = vadd.xlane.f32.xlu2 %v1179_v3 }
 0x2e1   : > { %1177 = vadd.xlane.f32.xlu1 %v1176_v36 }
 0x2e8   : > { %1153 = vadd.xlane.f32.xlu0 %v1152_v0  ;;  %1147 = vadd.xlane.f32.xlu2 %v1146_v9 }
 0x2e9   : > { %1144 = vadd.xlane.f32.xlu1 %v1143_v35 }
 0x2f0   : > { %1156 = vadd.xlane.f32.xlu0 %v1155_v17  ;;  %1150 = vadd.xlane.f32.xlu2 %v1149_v28 }
 0x2f1   : > { %1189 = vadd.xlane.f32.xlu1 %v1188_v8 }
 0x2f8   : > { %1201 = vadd.xlane.f32.xlu0 %v1200_v1  ;;  %1195 = vadd.xlane.f32.xlu2 %v1194_v59  ;;  %v1125_v59 = vsel %vm369_vm0, %v1033_v47, -inf }
 0x2f9   : > { %1192 = vadd.xlane.f32.xlu1 %v1191_v7 }
 0x2fb   : > { %v2662_v26 = vpop.xlane.xlu0 %1042  ;;  %v2664_v58 = vpop.xlane.xlu2 %1039 }
 0x2fc   : > { %v2666_v10 = vpop.xlane.xlu1 %1036  ;;  %v1294_v15 = vperm.slane %v2662_v26, %v2418_v62  ;;  %v1292_v41 = vperm.slane %v2664_v58, %v2487_v5 }
 0x2fd   : > { %v1291_v14 = vperm.slane %v2666_v10, %v2418_v62  ;;  %v1218_v10 = vsel %vm369_vm0, %v1032_v42, 0.0 }
 0x2ff   : > { %v1293_v17 = vsel %vm991_vm11, %v1292_v41, %v1291_v14 }
 0x300   : > { %1204 = vadd.xlane.f32.xlu0 %v1203_v30  ;;  %1198 = vadd.xlane.f32.xlu2 %v1197_v4 }
 0x301   : > { %1159 = vadd.xlane.f32.xlu1 %v1158_v38 }
 0x303   : > { %v2673_v25 = vpop.xlane.xlu0 %1057  ;;  %v1049_v21 = vpop.xlane.xlu2 %1048 }
 0x304   : > { %v1046_v60 = vpop.xlane.xlu1 %1045  ;;  %v1297_v55 = vperm.slane %v1049_v21, %v2418_v62  ;;  %v1301_v24 = vperm.slane %v2673_v25, %v2487_v5 }
 0x305   : > { %v1295_v53 = vperm.slane %v1046_v60, %v2487_v5 }
 0x307   : > { %v1296_v43 = vsel %vm991_vm11, %v1295_v53, %v1294_v15 }
 0x308   : > { %1168 = vadd.xlane.f32.xlu0 %v1167_v52  ;;  %1165 = vadd.xlane.f32.xlu2 %v1164_v40  ;;  %v1339_v8 = vsel %vm872_vm3, %v1296_v43, %v1293_v17 }
 0x309   : > { %1162 = vadd.xlane.f32.xlu1 %v1161_v32 }
 0x30b   : > { %v2681_v31 = vpop.xlane.xlu0 %1066  ;;  %v1055_v12 = vpop.xlane.xlu2 %1054 }
 0x30c   : > { %v1052_v13 = vpop.xlane.xlu1 %1051  ;;  %v1300_v19 = vperm.slane %v1055_v12, %v2418_v62  ;;  %v1306_v7 = vperm.slane %v2681_v31, %v2418_v62 }
 0x30d   : > { %v1298_v27 = vperm.slane %v1052_v13, %v2487_v5 }
 0x30e   : > { %v1302_v26 = vsel %vm991_vm11, %v1301_v24, %v1300_v19 }
 0x30f   : > { %v1299_v36 = vsel %vm991_vm11, %v1298_v27, %v1297_v55 }
 0x310   : > { %1213 = vadd.xlane.f32.xlu0 %v1212_v61  ;;  %1117 = vmax.xlane.f32.xlu2 %v1116_v54  ;;  %v1340_v58 = vsel %vm874_vm4, %v1299_v36, %v1339_v8 }
 0x311   : > { %1207 = vadd.xlane.f32.xlu1 %v1206_v18  ;;  %v1341_v52 = vsel %vm876_vm5, %v1302_v26, %v1340_v58 }
 0x313   : > { %v2689_v11 = vpop.xlane.xlu0 %1075  ;;  %v1064_v50 = vpop.xlane.xlu2 %1063 }
 0x314   : > { %v1061_v2 = vpop.xlane.xlu1 %1060  ;;  %v1304_v0 = vperm.slane %v1064_v50, %v2487_v5  ;;  %v1310_v25 = vperm.slane %v2689_v11, %v2487_v5  ;;  %v1224_v11 = vsel %vm369_vm0, %v1034_v49, 0.0 }
 0x315   : > { %v1303_v9 = vperm.slane %v1061_v2, %v2418_v62 }
 0x317   : > { %v1305_v30 = vsel %vm991_vm11, %v1304_v0, %v1303_v9 }
 0x318   : > { %1216 = vadd.xlane.f32.xlu0 %v1215_v46  ;;  %1210 = vadd.xlane.f32.xlu2 %v1209_v20  ;;  %v1342_v12 = vsel %vm878_vm6, %v1305_v30, %v1341_v52 }
 0x319   : > { %1171 = vadd.xlane.f32.xlu1 %v1170_v44 }
 0x31b   : > { %v1085_v51 = vpop.xlane.xlu0 %1084  ;;  %v1073_v29 = vpop.xlane.xlu2 %1072 }
 0x31c   : > { %v1070_v45 = vpop.xlane.xlu1 %1069  ;;  %v1309_v4 = vperm.slane %v1073_v29, %v2418_v62  ;;  %v1315_v33 = vperm.slane %v1085_v51, %v2418_v62 }
 0x31d   : > { %v1307_v28 = vperm.slane %v1070_v45, %v2487_v5 }
 0x31e   : > { %v1311_v13 = vsel %vm991_vm11, %v1310_v25, %v1309_v4 }
 0x31f   : > { %v1308_v38 = vsel %vm991_vm11, %v1307_v28, %v1306_v7 }
 0x320   : > { %1129 = vmax.xlane.f32.xlu0 %v1128_v22  ;;  %1123 = vmax.xlane.f32.xlu2 %v1122_v56  ;;  %v1343_v61 = vsel %vm880_vm7, %v1308_v38, %v1342_v12 }
 0x321   : > { %1120 = vmax.xlane.f32.xlu1 %v1119_v16  ;;  %v1344_v6 = vsel %vm882_vm8, %v1311_v13, %v1343_v61 }
 0x322   : > { %v1354_v44 = vsel %vm513_vm1, 0.0, %v1344_v6 }
 0x323   : > { %v1094_v48 = vpop.xlane.xlu0 %1093  ;;  %v1082_v57 = vpop.xlane.xlu2 %1081 }
 0x324   : > { %v1313_v34 = vperm.slane %v1082_v57, %v2487_v5  ;;  %v1079_v3 = vpop.xlane.xlu1 %1078  ;;  %v1319_v40 = vperm.slane %v1094_v48, %v2487_v5 }
 0x325   : > { %v1312_v35 = vperm.slane %v1079_v3, %v2418_v62 }
 0x327   : > { %v1314_v1 = vsel %vm991_vm11, %v1313_v34, %v1312_v35 }
 0x328   : > { %1126 = vmax.xlane.f32.xlu2 %v1125_v59 }
 0x329   : > { %1219 = vadd.xlane.f32.xlu1 %v1218_v10 }
 0x32b   : > { %v1103_v21 = vpop.xlane.xlu0 %1102  ;;  %v1091_v60 = vpop.xlane.xlu2 %1090 }
 0x32c   : > { %v1318_v32 = vperm.slane %v1091_v60, %v2418_v62  ;;  %v1088_v31 = vpop.xlane.xlu1 %1087  ;;  %v1324_v27 = vperm.slane %v1103_v21, %v2418_v62 }
 0x32d   : > { %v1316_v37 = vperm.slane %v1088_v31, %v2487_v5 }
 0x32e   : > { %v1320_v54 = vsel %vm991_vm11, %v1319_v40, %v1318_v32 }
 0x32f   : > { %v1317_v18 = vsel %vm991_vm11, %v1316_v37, %v1315_v33 }
 0x330   : > { %v1345_v50 = vsel %vm870_vm2, %v1317_v18, %v1314_v1  ;;  %1225 = vadd.xlane.f32.xlu2 %v1224_v11 }
 0x331   : > { %1222 = vadd.xlane.f32.xlu1 %v1221_v39  ;;  %v1346_v2 = vsel %vm872_vm3, %v1320_v54, %v1345_v50 }
 0x333   : > { %v1112_v46 = vpop.xlane.xlu0 %1111  ;;  %v1100_v20 = vpop.xlane.xlu2 %1099 }
 0x334   : > { %v1322_v51 = vperm.slane %v1100_v20, %v2487_v5  ;;  %v1097_v29 = vpop.xlane.xlu1 %1096  ;;  %1358 = vrot.lane.b32.xlu0 %v1354_v44, %s2049_s30  ;;  %v1328_v56 = vperm.slane %v1112_v46, %v2487_v5 }
 0x335   : > { %v1321_v49 = vperm.slane %v1097_v29, %v2418_v62 }
 0x337   : > { %v1323_v23 = vsel %vm991_vm11, %v1322_v51, %v1321_v49 }
 0x338   : > { %v1347_v42 = vsel %vm874_vm4, %v1323_v23, %v1346_v2 }
 0x33b   : > { %v1136_v45 = vpop.xlane.xlu0 %1135  ;;  %v1109_v22 = vpop.xlane.xlu2 %1108 }
 0x33c   : > { %v1327_v53 = vperm.slane %v1109_v22, %v2418_v62  ;;  %v1106_v16 = vpop.xlane.xlu1 %1105  ;;  %v1228_v57 = vmul.f32 0.0625, %v1136_v45 }
 0x33d   : > { %v1325_v15 = vperm.slane %v1106_v16, %v2487_v5 }
 0x33e   : > { %v1329_v41 = vsel %vm991_vm11, %v1328_v56, %v1327_v53  ;;  %v1408_v34 = vperm.slane %v1228_v57, %v2487_v5 }
 0x33f   : > { %v1326_v14 = vsel %vm991_vm11, %v1325_v15, %v1324_v27 }
 0x340   : > { %v1348_v55 = vsel %vm876_vm5, %v1326_v14, %v1347_v42 }
 0x341   : > { %v1349_v48 = vsel %vm878_vm6, %v1329_v41, %v1348_v55 }
 0x343   : > { %v1175_v63 = vpop.xlane.xlu0 %1174  ;;  %v1133_v47 = vpop.xlane.xlu2 %1132 }
 0x344   : > { %v1227_v43 = vmul.f32 0.0625, %v1133_v47  ;;  %v1115_v19 = vpop.xlane.xlu1 %1114  ;;  %v1241_v24 = vmul.f32 0.0625, %v1175_v63 }
 0x345   : > { %v1330_v44 = vperm.slane %v1115_v19, %v2418_v62 }
 0x346   : > { %v1407_v3 = vperm.slane %v1227_v43, %v2418_v62  ;;  %v1428_v10 = vperm.slane %v1241_v24, %v2418_v62 }
 0x348   : > { %v2772_v36 = vsel %vm991_vm11, %v1408_v34, %v1407_v3 }
 0x34b   : > { %v1184_v0 = vpop.xlane.xlu0 %1183  ;;  %v1142_v9 = vpop.xlane.xlu2 %1141 }
 0x34c   : > { %v1139_v35 = vpop.xlane.xlu1 %1138  ;;  %v1244_v17 = vmul.f32 0.0625, %v1184_v0  ;;  %v1230_v39 = vmul.f32 0.0625, %v1142_v9 }
 0x34d   : > { %v1229_v6 = vmul.f32 0.0625, %v1139_v35 }
 0x34e   : > { %v1432_v26 = vperm.slane %v1244_v17, %v2487_v5  ;;  %v1411_v23 = vperm.slane %v1230_v39, %v2487_v5 }
 0x34f   : > { %v1410_v42 = vperm.slane %v1229_v6, %v2418_v62 }
 0x351   : > { %v1412_v47 = vsel %vm991_vm11, %v1411_v23, %v1410_v42 }
 0x352   : > { %v1455_v24 = vsel %vm872_vm3, %v1412_v47, %v2772_v36 }
 0x353   : > { %v2774_v28 = vpop.xlane.xlu0 %1186  ;;  %v1181_v8 = vpop.xlane.xlu2 %1180 }
 0x354   : > { %v1243_v1 = vmul.f32 0.0625, %v1181_v8  ;;  %v1178_v59 = vpop.xlane.xlu1 %1177 }
 0x355   : > { %v1242_v7 = vmul.f32 0.0625, %v1178_v59 }
 0x356   : > { %v1431_v58 = vperm.slane %v1243_v1, %v2418_v62 }
 0x357   : > { %v1429_v30 = vperm.slane %v1242_v7, %v2487_v5 }
 0x358   : > { %v1433_v4 = vsel %vm991_vm11, %v1432_v26, %v1431_v58 }
 0x359   : > { %v1430_v38 = vsel %vm991_vm11, %v1429_v30, %v1428_v10 }
 0x35a   : > { %v2783_v25 = vsel %vm870_vm2, %v1433_v4, %v1430_v38  ;;  %vm1367_vm2 = vcmask 7168  }
 0x35b   : > { %v1154_v21 = vpop.xlane.xlu0 %1153  ;;  %v1148_v60 = vpop.xlane.xlu2 %1147 }
 0x35c   : > { %v1145_v52 = vpop.xlane.xlu1 %1144  ;;  %v1232_v2 = vmul.f32 0.0625, %v1148_v60  ;;  %v1234_v56 = vmul.f32 0.0625, %v1154_v21 }
 0x35d   : > { %v1231_v46 = vmul.f32 0.0625, %v1145_v52 }
 0x35e   : > { %v1414_v15 = vperm.slane %v1232_v2, %v2487_v5  ;;  %v1417_v43 = vperm.slane %v1234_v56, %v2487_v5 }
 0x35f   : > { %v1413_v41 = vperm.slane %v1231_v46, %v2418_v62 }
 0x361   : > { %v1415_v3 = vsel %vm991_vm11, %v1414_v15, %v1413_v41 }
 0x362   : > { %v1456_v59 = vsel %vm874_vm4, %v1415_v3, %v1455_v24 }
 0x363   : > { %v1157_v40 = vpop.xlane.xlu0 %1156  ;;  %v1151_v32 = vpop.xlane.xlu2 %1150 }
 0x364   : > { %v1190_v31 = vpop.xlane.xlu1 %1189  ;;  %v1233_v51 = vmul.f32 0.0625, %v1151_v32  ;;  %v1235_v14 = vmul.f32 0.0625, %v1157_v40 }
 0x365   : > { %v1246_v21 = vmul.f32 0.0625, %v1190_v31 }
 0x366   : > { %v1416_v57 = vperm.slane %v1233_v51, %v2418_v62  ;;  %v1419_v0 = vperm.slane %v1235_v14, %v2418_v62 }
 0x367   : > { %v1435_v31 = vperm.slane %v1246_v21, %v2487_v5 }
 0x36b   : > { %v2785_v12 = vpop.xlane.xlu0 %1201  ;;  %v1196_v33 = vpop.xlane.xlu2 %1195 }
 0x36c   : > { %v1193_v37 = vpop.xlane.xlu1 %1192  ;;  %v1248_v52 = vmul.f32 0.0625, %v1196_v33  ;;  %v1250_v46 = vmul.f32 0.0625, %v2785_v12 }
 0x36d   : > { %v1247_v40 = vmul.f32 0.0625, %v1193_v37 }
 0x36e   : > { %v1438_v37 = vperm.slane %v1248_v52, %v2487_v5  ;;  %v1496_v52 = vstv %s2875_s12 }
 0x373   : > { %v2787_v13 = vpop.xlane.xlu0 %1204  ;;  %v1199_v61 = vpop.xlane.xlu2 %1198 }
 0x374   : > { %v1160_v54 = vpop.xlane.xlu1 %1159 }
 0x375   : > { %v1236_v45 = vmul.f32 0.0625, %v1160_v54 }
 0x377   : > { %v1420_v63 = vperm.slane %v1236_v45, %v2487_v5  ;;  %v1441_v45 = vperm.slane %v1250_v46, %v2487_v5  ;;  %v1530_v46 = vstv %s2891_s15  ;;  %s336_s15 = scalar_lea.vmem %s3080_s8, %s3091_s28 }
 0x379   : > { %v1421_v8 = vsel %vm991_vm11, %v1420_v63, %v1419_v0 }
 0x37b   : > { %v1169_v18 = vpop.xlane.xlu0 %1168  ;;  %v1166_v11 = vpop.xlane.xlu2 %1165 }
 0x37c   : > { %v1163_v50 = vpop.xlane.xlu1 %1162  ;;  %v1238_v53 = vmul.f32 0.0625, %v1166_v11  ;;  %v1239_v9 = vmul.f32 0.0625, %v1169_v18  ;;  %v1245_v18 = vmul.f32 0.0625, %v2774_v28  ;;  %v1249_v11 = vmul.f32 0.0625, %v1199_v61 }
 0x37d   : > { %v1237_v16 = vmul.f32 0.0625, %v1163_v50  ;;  %v1251_v28 = vmul.f32 0.0625, %v2787_v13 }
 0x37e   : > { %v1423_v19 = vperm.slane %v1238_v53, %v2487_v5  ;;  %v1425_v58 = vperm.slane %v1239_v9, %v2418_v62  ;;  %v1440_v51 = vperm.slane %v1249_v11, %v2418_v62 }
 0x37f   : > { %v1422_v34 = vperm.slane %v1237_v16, %v2418_v62  ;;  %v1443_v53 = vperm.slane %v1251_v28, %v2418_v62 }
 0x381   : > { %v1424_v7 = vsel %vm991_vm11, %v1423_v19, %v1422_v34 }
 0x383   : > { %v1118_v20 = vpop.xlane.xlu2 %1117  ;;  %v1214_v22 = vpop.xlane.xlu0 %1213 }
 0x384   : > { %v1331_v29 = vperm.slane %v1118_v20, %v2487_v5  ;;  %v1208_v49 = vpop.xlane.xlu1 %1207  ;;  %v1437_v20 = vperm.slane %v1247_v40, %v2418_v62 }
 0x385   : > { %v1252_v6 = vmul.f32 0.0625, %v1208_v49 }
 0x386   : > { %v1332_v27 = vsel %vm991_vm11, %v1331_v29, %v1330_v44  ;;  %v1434_v44 = vperm.slane %v1245_v18, %v2418_v62  ;;  %v1254_v29 = vmul.f32 0.0625, %v1214_v22  ;;  %v1439_v56 = vsel %vm991_vm11, %v1438_v37, %v1437_v20 }
 0x387   : > { %v1350_v55 = vsel %vm880_vm7, %v1332_v27, %v1349_v48  ;;  %v1418_v48 = vsel %vm991_vm11, %v1417_v43, %v1416_v57  ;;  %v1444_v23 = vperm.slane %v1252_v6, %v2487_v5  ;;  %v1442_v22 = vsel %vm991_vm11, %v1441_v45, %v1440_v51 }
 0x388   : > { %v1457_v26 = vsel %vm876_vm5, %v1418_v48, %v1456_v59  ;;  %v1436_v12 = vsel %vm991_vm11, %v1435_v31, %v1434_v44  ;;  %v1447_v15 = vperm.slane %v1254_v29, %v2487_v5  ;;  %v1677_v6 = vstv %s1965_s14 }
 0x389   : > { %v1458_v4 = vsel %vm878_vm6, %v1421_v8, %v1457_v26  ;;  %v1462_v57 = vsel %vm872_vm3, %v1436_v12, %v2783_v25  ;;  %v1445_v63 = vsel %vm991_vm11, %v1444_v23, %v1443_v53  ;;  %vm1371_vm3 = vcmask 138240  }
 0x38a   : > { %v1459_v36 = vsel %vm880_vm7, %v1424_v7, %v1458_v4  ;;  %v1463_v43 = vsel %vm874_vm4, %v1439_v56, %v1462_v57  ;;  %vm1684_vm4 = vcmask 1045504   ;;  %v1516_v12 = vstv %s2893_s17 }
 0x38b   : > { %v1211_v35 = vpop.xlane.xlu2 %1210  ;;  %v1217_v10 = vpop.xlane.xlu0 %1216  ;;  %v1464_v25 = vsel %vm876_vm5, %v1442_v22, %v1463_v43  ;;  %v1593_v45 = vstv %s1961_s16  ;;  %vm1824_vm5 = vcmask 8192  }
 0x38c   : > { %v1172_v17 = vpop.xlane.xlu1 %1171  ;;  %v1253_v33 = vmul.f32 0.0625, %v1211_v35  ;;  %v1255_v16 = vmul.f32 0.0625, %v1217_v10  ;;  %v1465_v35 = vsel %vm878_vm6, %v1445_v63, %v1464_v25  ;;  %v1502_v10 = vstv %s2849_s9  ;;  %s1974_s9 = sshll.u32 %s3091_s28, 4 }
 0x38d   : > { %v1240_v1 = vmul.f32 0.0625, %v1172_v17  ;;  %v1544_v25 = vstv %s2916_s23  ;;  %s333_s12 = scalar_lea.vmem %s3079_s7, %s1974_s9 }
 0x38e   : > { %v1446_v13 = vperm.slane %v1253_v33, %v2418_v62  ;;  %v1449_v3 = vperm.slane %v1255_v16, %v2418_v62 }
 0x38f   : > { %v1426_v30 = vperm.slane %v1240_v1, %v2487_v5 }
 0x390   : > { %v1448_v34 = vsel %vm991_vm11, %v1447_v15, %v1446_v13  ;;  %v1576_v15 = vstv %s1960_s18 }
 0x391   : > { %v1427_v38 = vsel %vm991_vm11, %v1426_v30, %v1425_v58  ;;  %v1466_v17 = vsel %vm880_vm7, %v1448_v34, %v1465_v35  ;;  %v1695_v34 = vstv %s1966_s20  ;;  %v1712_v35 = vstv %s2910_s21 }
 0x392   : > { %v1460_v60 = vsel %vm882_vm8, %v1427_v38, %v1459_v36 }
 0x393   : > { %v1124_v32 = vpop.xlane.xlu2 %1123  ;;  %v1470_v54 = vsel %vm513_vm1, 0.0, %v1460_v60  ;;  %v1130_v42 = vpop.xlane.xlu0 %1129 }
 0x394   : > { %v1334_v50 = vperm.slane %v1124_v32, %v2487_v5  ;;  %1474 = vrot.lane.b32.xlu2 %v1470_v54, %s2049_s30  ;;  %v1121_v39 = vpop.xlane.xlu1 %1120  ;;  %v1337_v41 = vperm.slane %v1130_v42, %v2487_v5 }
 0x395   : > { %v1333_v2 = vperm.slane %v1121_v39, %v2418_v62 }
 0x397   : > { %v1335_v61 = vsel %vm991_vm11, %v1334_v50, %v1333_v2  ;;  %v1558_v50 = vstv %s1959_s13 }
 0x398   : > { %v1351_v49 = vsel %vm882_vm8, %v1335_v61, %v1350_v55 }
 0x399   : > { %1360 = vrot.lane.b32.xlu1 %v1351_v49, %s2049_s30 }
 0x39b   : > { %v1127_v27 = vpop.xlane.xlu2 %1126 }
 0x39c   : > { %v1336_v14 = vperm.slane %v1127_v27, %v2418_v62  ;;  %v1220_v55 = vpop.xlane.xlu1 %1219 }
 0x39d   : > { %v1256_v47 = vmul.f32 0.0625, %v1220_v55 }
 0x39e   : > { %v1338_v19 = vsel %vm991_vm11, %v1337_v41, %v1336_v14 }
 0x39f   : > { %v1450_v0 = vperm.slane %v1256_v47, %v2487_v5  ;;  %v1355_v9 = vsel %vm513_vm1, %v1338_v19, 0.0 }
 0x3a1   : > { %1362 = vrot.lane.b32.xlu1 %v1355_v9, %s2049_s30  ;;  %v1451_v48 = vsel %vm991_vm11, %v1450_v0, %v1449_v3 }
 0x3a2   : > { %v1467_v24 = vsel %vm882_vm8, %v1451_v48, %v1466_v17  ;;  %v1635_v48 = vstv %s2912_s22 }
 0x3a3   : > { %1476 = vrot.lane.b32.xlu0 %v1467_v24, %s2049_s30  ;;  %v1226_v8 = vpop.xlane.xlu2 %1225 }
 0x3a4   : > { %v1258_v1 = vmul.f32 0.0625, %v1226_v8  ;;  %v1223_v59 = vpop.xlane.xlu1 %1222 }
 0x3a5   : > { %v1257_v7 = vmul.f32 0.0625, %v1223_v59 }
 0x3a6   : > { %v1453_v26 = vperm.slane %v1258_v1, %v2487_v5  ;;  %v1359_v58 = vpop.permute.xlu0 %1358  ;;  %v1490_v5 = vstv %s2873_s11 }
 0x3a7   : > { %v1452_v30 = vperm.slane %v1257_v7, %v2418_v62  ;;  %v1368_v4 = vsel %vm1367_vm2, 0.0, %v1359_v58 }
 0x3a8   : > { %v2866_v38 = vsel %vm1371_vm3, %v1368_v4, 0.0 }
 0x3a9   : > { %v1454_v36 = vsel %vm991_vm11, %v1453_v26, %v1452_v30  ;;  %v1503_v21 = vmul.f32 %v1502_v10, %v2866_v38  ;;  %v1491_v54 = vmul.f32 %v1490_v5, %v2866_v38  ;;  %v1559_v33 = vmul.f32 %v1558_v50, %v2866_v38 }
 0x3aa   : > { %v1471_v60 = vsel %vm513_vm1, %v1454_v36, 0.0  ;;  %v1678_v28 = vmul.f32 %v1677_v6, %v2866_v38  ;;  %vm1565_vm1 = vcmask 1046528   ;;  %v1531_v22 = vmul.f32 %v1530_v46, %v2866_v38 }
 0x3ab   : > { %1478 = vrot.lane.b32.xlu0 %v1471_v60, %s2049_s30  ;;  %1507 = vrot.lane.b32.xlu2 %v1503_v21, %s2050_s10  ;;  %v1566_v51 = vrot.slane %v1559_v33, 1  ;;  %v1594_v57 = vmul.f32 %v1593_v45, %v2866_v38  ;;  %s1970_s30 = sld [smem:[#allocation2 + $0x11]] }
 0x3ac   : > { %v1685_v49 = vrot.slane %v1678_v28, 2 }
 0x3ad   : > { %v1600_v9 = vrot.slane %v1594_v57, 1 }
 0x3ee   : > { %v1475_v62 = vpop.permute.xlu2 %1474 }
 0x3ef   : > { %v1483_v40 = vsel %vm1367_vm2, 0.0, %v1475_v62 }
 0x3f0   : > { %v2881_v32 = vsel %vm1371_vm3, %v1483_v40, 0.0 }
 0x3f1   : > { %v1497_v18 = vmul.f32 %v1496_v52, %v2881_v32  ;;  %v1517_v55 = vmul.f32 %v1516_v12, %v2881_v32  ;;  %v1577_v19 = vmul.f32 %v1576_v15, %v2881_v32  ;;  %v1696_v17 = vmul.f32 %v1695_v34, %v2881_v32 }
 0x3f3   : > { %v2889_v11 = vadd.f32 %v1497_v18, %v1491_v54  ;;  %v1583_v59 = vrot.slane %v1577_v19, 1  ;;  %v1545_v54 = vmul.f32 %v1544_v25, %v2881_v32 }
 0x40b   : > { %v1361_v39 = vpop.permute.xlu1 %1360 }
 0x40c   : > { %v1369_v2 = vsel %vm1367_vm2, 0.0, %v1361_v39  ;;  %v1702_v39 = vrot.slane %v1696_v17, 2 }
 0x40d   : > { %v2897_v31 = vsel %vm1371_vm3, %v1369_v2, 0.0 }
 0x40e   : > { %v1532_v37 = vmul.f32 %v1530_v46, %v2897_v31  ;;  %v1504_v20 = vmul.f32 %v1502_v10, %v2897_v31  ;;  %v1560_v61 = vmul.f32 %v1558_v50, %v2897_v31  ;;  %v2908_v44 = vmul.f32 %v1677_v6, %v2897_v31 }
 0x40f   : > { %v2923_v53 = vmul.f32 %v1593_v45, %v2897_v31  ;;  %v1492_v8 = vmul.f32 %v1490_v5, %v2897_v31  ;;  %v1714_v18 = vmul.f32 %v1712_v35, %v2897_v31 }
 0x410   : > { %1537 = vrot.lane.b32.xlu0 %v1532_v37, %s2051_s19  ;;  %1509 = vrot.lane.b32.xlu1 %v1504_v20, %s2050_s10  ;;  %v1567_v29 = vrot.slane %v1560_v61, 1  ;;  %v1686_v23 = vrot.slane %v2908_v44, 2 }
 0x411   : > { %v1601_v43 = vrot.slane %v2923_v53, 1 }
 0x412   : > { %v2919_v13 = vsel %vm1565_vm1, %v1566_v51, %v1567_v29  ;;  %v2926_v16 = vsel %vm1684_vm4, %v1685_v49, %v1686_v23 }
 0x413   : > { %v1363_v42 = vpop.permute.xlu1 %1362  ;;  %v1602_v24 = vsel %vm1565_vm1, %v1600_v9, %v1601_v43 }
 0x414   : > { %v1370_v56 = vsel %vm1367_vm2, 0.0, %v1363_v42 }
 0x415   : > { %v1477_v27 = vpop.permute.xlu0 %1476  ;;  %v2930_v41 = vsel %vm1371_vm3, %v1370_v56, 0.0  ;;  %v1614_v56 = vstv %s1962_s24 }
 0x416   : > { %v1484_v14 = vsel %vm1367_vm2, 0.0, %v1477_v27  ;;  %v1561_v3 = vmul.f32 %v1558_v50, %v2930_v41  ;;  %v1680_v0 = vmul.f32 %v1677_v6, %v2930_v41  ;;  %v1715_v26 = vmul.f32 %v1712_v35, %v2930_v41 }
 0x417   : > { %v2936_v63 = vsel %vm1371_vm3, %v1484_v14, 0.0  ;;  %v1638_v58 = vmul.f32 %v1635_v48, %v2930_v41  ;;  %v1637_v50 = vmul.f32 %v1635_v48, %v2897_v31  ;;  %v1596_v6 = vmul.f32 %v1593_v45, %v2930_v41 }
 0x418   : > { %1521 = vrot.lane.b32.xlu0 %v1517_v55, %s2050_s10  ;;  %1535 = vrot.lane.b32.xlu1 %v1531_v22, %s2051_s19  ;;  %v1518_v47 = vmul.f32 %v1516_v12, %v2936_v63  ;;  %v1498_v1 = vmul.f32 %v1496_v52, %v2936_v63  ;;  %v1578_v10 = vmul.f32 %v1576_v15, %v2936_v63  ;;  %v1569_v30 = vrot.slane %v1561_v3, 1 }
 0x419   : > { %v1688_v4 = vrot.slane %v1680_v0, 2  ;;  %v1546_v21 = vmul.f32 %v1544_v25, %v2936_v63  ;;  %v1697_v40 = vmul.f32 %v1695_v34, %v2936_v63  ;;  %v1722_v37 = vrot.slane %v1715_v26, 2 }
 0x41a   : > { %1523 = vrot.lane.b32.xlu2 %v1518_v47, %s2050_s10  ;;  %v2962_v60 = vadd.f32 %v1498_v1, %v1492_v8  ;;  %v1584_v5 = vrot.slane %v1578_v10, 1  ;;  %v2968_v52 = vsel %vm1565_vm1, %v1567_v29, %v1569_v30  ;;  %v1645_v28 = vrot.slane %v1638_v58, 1 }
 0x41b   : > { %v1703_v33 = vrot.slane %v1697_v40, 2  ;;  %v2983_v20 = vsel %vm1684_vm4, %v1686_v23, %v1688_v4  ;;  %v1720_v29 = vrot.slane %v1714_v18, 2  ;;  %v1643_v49 = vrot.slane %v1637_v50, 1 }
 0x41c   : > { %v2978_v2 = vsel %vm1565_vm1, %v1583_v59, %v1584_v5  ;;  %v1603_v42 = vrot.slane %v1596_v6, 1  ;;  %v1616_v14 = vmul.f32 %v1614_v56, %v2936_v63  ;;  %v1713_v55 = vmul.f32 %v1712_v35, %v2866_v38 }
 0x41d   : > { %v1479_v7 = vpop.permute.xlu0 %1478  ;;  %v2986_v44 = vsel %vm1684_vm4, %v1702_v39, %v1703_v33  ;;  %v1723_v53 = vsel %vm1684_vm4, %v1720_v29, %v1722_v37  ;;  %v1646_v23 = vsel %vm1565_vm1, %v1643_v49, %v1645_v28  ;;  %v1636_v47 = vmul.f32 %v1635_v48, %v2866_v38 }
 0x41e   : > { %v1485_v36 = vsel %vm1367_vm2, 0.0, %v1479_v7  ;;  %v1622_v19 = vrot.slane %v1616_v14, 1  ;;  %v1656_v3 = vstv %s1964_s25  ;;  %v1615_v17 = vmul.f32 %v1614_v56, %v2881_v32 }
 0x41f   : > { %v2965_v62 = vsel %vm1371_vm3, %v1485_v36, 0.0  ;;  %v1642_v25 = vrot.slane %v1636_v47, 1  ;;  %v1657_v48 = vmul.f32 %v1656_v3, %v2881_v32  ;;  %v1754_v26 = vstv %s1969_s26 }
 0x420   : > { %1605 = vrot.lane.b32.xlu0 %v1602_v24, %s2050_s10  ;;  %1551 = vrot.lane.b32.xlu1 %v1546_v21, %s2051_s19  ;;  %v1579_v46 = vmul.f32 %v1576_v15, %v2965_v62  ;;  %v1698_v51 = vmul.f32 %v1695_v34, %v2965_v62  ;;  %v1617_v27 = vmul.f32 %v1614_v56, %v2965_v62  ;;  %v1719_v34 = vrot.slane %v1713_v55, 2 }
 0x421   : > { %v1604_v15 = vsel %vm1565_vm1, %v1601_v43, %v1603_v42  ;;  %v1658_v43 = vmul.f32 %v1656_v3, %v2936_v63  ;;  %v1644_v35 = vsel %vm1565_vm1, %v1642_v25, %v1643_v49  ;;  %v1659_v24 = vmul.f32 %v1656_v3, %v2965_v62 }
 0x422   : > { %1549 = vrot.lane.b32.xlu2 %v1545_v54, %s2051_s19  ;;  %v1586_v61 = vrot.slane %v1579_v46, 1  ;;  %v1705_v45 = vrot.slane %v1698_v51, 2  ;;  %v1624_v57 = vrot.slane %v1617_v27, 1  ;;  %v1721_v9 = vsel %vm1684_vm4, %v1719_v34, %v1720_v29 }
 0x423   : > { %v1664_v8 = vrot.slane %v1658_v43, 1  ;;  %v1663_v1 = vrot.slane %v1657_v48, 1  ;;  %v1621_v59 = vrot.slane %v1615_v17, 1  ;;  %v1666_v7 = vrot.slane %v1659_v24, 1 }
 0x424   : > { %v2990_v12 = vsel %vm1565_vm1, %v1584_v5, %v1586_v61  ;;  %v2996_v22 = vsel %vm1684_vm4, %v1703_v33, %v1705_v45  ;;  %v1625_v0 = vsel %vm1565_vm1, %v1622_v19, %v1624_v57  ;;  %v1733_v58 = vstv %s1968_s29 }
 0x425   : > { %v1665_v10 = vsel %vm1565_vm1, %v1663_v1, %v1664_v8  ;;  %v1623_v30 = vsel %vm1565_vm1, %v1621_v59, %v1622_v19  ;;  %v1756_v4 = vmul.f32 %v1754_v26, %v2897_v31  ;;  %v1736_v36 = vmul.f32 %v1733_v58, %v2965_v62 }
 0x426   : > { %v1667_v21 = vsel %vm1565_vm1, %v1664_v8, %v1666_v7  ;;  %v1755_v5 = vmul.f32 %v1754_v26, %v2866_v38  ;;  %v1735_v40 = vmul.f32 %v1733_v58, %v2936_v63  ;;  %v1734_v54 = vmul.f32 %v1733_v58, %v2881_v32 }
 0x427   : > { %v1762_v18 = vrot.slane %v1756_v4, 2  ;;  %v1743_v50 = vrot.slane %v1736_v36, 2  ;;  %v1775_v46 = vstv %s1970_s30  ;;  %v1757_v29 = vmul.f32 %v1754_v26, %v2930_v41 }
 0x428   : > { %1726 = vrot.lane.b32.xlu0 %v1723_v53, %s2050_s10  ;;  %1649 = vrot.lane.b32.xlu1 %v1646_v23, %s2051_s19  ;;  %v1761_v39 = vrot.slane %v1755_v5, 2  ;;  %v1741_v31 = vrot.slane %v1735_v40, 2  ;;  %v1740_v6 = vrot.slane %v1734_v54, 2  ;;  %v1777_v28 = vmul.f32 %v1775_v46, %v2936_v63 }
 0x429   : > { %v1778_v38 = vmul.f32 %v1775_v46, %v2965_v62  ;;  %v1776_v51 = vmul.f32 %v1775_v46, %v2881_v32  ;;  %v1764_v56 = vrot.slane %v1757_v29, 2  ;;  %v1508_v32 = vpop.permute.xlu2 %1507 }
 0x42a   : > { %1607 = vrot.lane.b32.xlu2 %v1604_v15, %s2050_s10  ;;  %v1763_v33 = vsel %vm1684_vm4, %v1761_v39, %v1762_v18  ;;  %v1744_v37 = vsel %vm1684_vm4, %v1741_v31, %v1743_v50  ;;  %v1742_v61 = vsel %vm1684_vm4, %v1740_v6, %v1741_v31  ;;  %v1783_v49 = vrot.slane %v1777_v28, 2 }
 0x42b   : > { %v1785_v42 = vrot.slane %v1778_v38, 2  ;;  %v1782_v45 = vrot.slane %v1776_v51, 2  ;;  %v1765_v53 = vsel %vm1684_vm4, %v1762_v18, %v1764_v56  ;;  %v1513_v14 = vadd.f32 %v1508_v32, %v2889_v11 }
 0x42d   : > { %v1786_v63 = vsel %vm1684_vm4, %v1783_v49, %v1785_v42  ;;  %v1784_v62 = vsel %vm1684_vm4, %v1782_v45, %v1783_v49 }
 0x430   : > { %1628 = vrot.lane.b32.xlu0 %v1625_v0, %s2050_s10  ;;  %1724 = vrot.lane.b32.xlu1 %v1721_v9, %s2050_s10 }
 0x432   : > { %1647 = vrot.lane.b32.xlu2 %v1644_v35, %s2051_s19 }
 0x438   : > { %1668 = vrot.lane.b32.xlu0 %v1665_v10, %s2051_s19  ;;  %1626 = vrot.lane.b32.xlu1 %v1623_v30, %s2050_s10 }
 0x43a   : > { %1670 = vrot.lane.b32.xlu2 %v1667_v21, %s2051_s19 }
 0x440   : > { %1766 = vrot.lane.b32.xlu0 %v1763_v33, %s2051_s19  ;;  %1747 = vrot.lane.b32.xlu1 %v1744_v37, %s2050_s10 }
 0x442   : > { %1745 = vrot.lane.b32.xlu2 %v1742_v61, %s2050_s10 }
 0x448   : > { %1789 = vrot.lane.b32.xlu0 %v1786_v63, %s2051_s19  ;;  %1787 = vrot.lane.b32.xlu1 %v1784_v62, %s2051_s19 }
 0x44a   : > { %1768 = vrot.lane.b32.xlu2 %v1765_v53, %s2051_s19 }
 0x474   : > { %v1524_v41 = vpop.permute.xlu2 %1523 }
 0x47c   : > { %v1550_v15 = vpop.permute.xlu2 %1549 }
 0x482   : > { %v1538_v23 = vpop.permute.xlu0 %1537  ;;  %v1510_v27 = vpop.permute.xlu1 %1509 }
 0x483   : > { %v1514_v55 = vadd.f32 %v1510_v27, %v2962_v60 }
 0x484   : > { %v1608_v0 = vpop.permute.xlu2 %1607 }
 0x485   : > { %v1528_v34 = vadd.f32 %v1524_v41, %v1514_v55 }
 0x487   : > { %v1542_v43 = vadd.f32 %v1538_v23, %v1528_v34 }
 0x48a   : > { %v1522_v57 = vpop.permute.xlu0 %1521  ;;  %v1536_v47 = vpop.permute.xlu1 %1535 }
 0x48b   : > { %v1527_v19 = vadd.f32 %v1522_v57, %v1513_v14 }
 0x48c   : > { %v1648_v60 = vpop.permute.xlu2 %1647 }
 0x48d   : > { %v1541_v3 = vadd.f32 %v1536_v47, %v1527_v19 }
 0x48f   : > { %v1555_v9 = vadd.f32 %v1550_v15, %v1541_v3 }
 0x491   : > { %v1573_v25 = vadd.f32 %v2919_v13, %v1555_v9 }
 0x492   : > { %v1606_v35 = vpop.permute.xlu0 %1605  ;;  %v1552_v48 = vpop.permute.xlu1 %1551 }
 0x493   : > { %v1590_v17 = vadd.f32 %v2978_v2, %v1573_v25  ;;  %v1556_v24 = vadd.f32 %v1552_v48, %v1542_v43 }
 0x494   : > { %v1671_v30 = vpop.permute.xlu2 %1670 }
 0x495   : > { %v1574_v8 = vadd.f32 %v2968_v52, %v1556_v24  ;;  %v1611_v36 = vadd.f32 %v1606_v35, %v1590_v17 }
 0x497   : > { %v1591_v11 = vadd.f32 %v2990_v12, %v1574_v8 }
 0x499   : > { %v1612_v7 = vadd.f32 %v1608_v0, %v1591_v11 }
 0x49a   : > { %v1727_v1 = vpop.permute.xlu0 %1726  ;;  %v1650_v59 = vpop.permute.xlu1 %1649 }
 0x49c   : > { %v1746_v54 = vpop.permute.xlu2 %1745 }
 0x4a2   : > { %v1629_v26 = vpop.permute.xlu0 %1628  ;;  %v1725_v58 = vpop.permute.xlu1 %1724 }
 0x4a3   : > { %v1633_v10 = vadd.f32 %v1629_v26, %v1612_v7 }
 0x4a5   : > { %v1654_v4 = vadd.f32 %v1650_v59, %v1633_v10 }
 0x4a7   : > { %v1675_v13 = vadd.f32 %v1671_v30, %v1654_v4 }
 0x4a9   : > { %v1693_v21 = vadd.f32 %v2983_v20, %v1675_v13  ;;  %v1769_v20 = vpop.permute.xlu2 %1768 }
 0x4aa   : > { %v1669_v2 = vpop.permute.xlu0 %1668  ;;  %v1627_v5 = vpop.permute.xlu1 %1626 }
 0x4ab   : > { %v1632_v40 = vadd.f32 %v1627_v5, %v1611_v36  ;;  %v1710_v52 = vadd.f32 %v2996_v22, %v1693_v21 }
 0x4ad   : > { %v1653_v12 = vadd.f32 %v1648_v60, %v1632_v40  ;;  %v1731_v46 = vadd.f32 %v1727_v1, %v1710_v52 }
 0x4af   : > { %v1674_v18 = vadd.f32 %v1669_v2, %v1653_v12 }
 0x4b1   : > { %v1692_v50 = vadd.f32 %v2926_v16, %v1674_v18 }
 0x4b2   : > { %v1767_v39 = vpop.permute.xlu0 %1766  ;;  %v1748_v31 = vpop.permute.xlu1 %1747 }
 0x4b3   : > { %v1709_v6 = vadd.f32 %v2986_v44, %v1692_v50  ;;  %v1752_v37 = vadd.f32 %v1748_v31, %v1731_v46 }
 0x4b5   : > { %v1730_v33 = vadd.f32 %v1725_v58, %v1709_v6  ;;  %v1773_v61 = vadd.f32 %v1769_v20, %v1752_v37 }
 0x4b7   : > { %v1751_v28 = vadd.f32 %v1746_v54, %v1730_v33 }
 0x4b9   : > { %v1772_v38 = vadd.f32 %v1767_v39, %v1751_v28 }
 0x4ba   : > { %v1790_v22 = vpop.permute.xlu0 %1789  ;;  %v1788_v51 = vpop.permute.xlu1 %1787 }
 0x4bb   : > { %v1794_v29 = vadd.f32 %v1790_v22, %v1773_v61  ;;  %v1793_v16 = vadd.f32 %v1788_v51, %v1772_v38 }
 0x4bd   : > { %1796 = vst.msk [vmem:[%s333_s12 + $0x8] sm:$0xff] %vm369_vm0, %v1794_v29  ;;  %v1798_v44 = vsel %vm369_vm0, %v1794_v29, 0.0  ;;  %v1810_v49 = vmul.f32 %v1794_v29, %v1794_v29  ;;  %v1797_v42 = vsel %vm369_vm0, %v1793_v16, 0.0  ;;  %v1809_v45 = vmul.f32 %v1793_v16, %v1793_v16 }
 0x4be   : > { %1795 = vst.msk [vmem:[%s333_s12] sm:$0xff] %vm369_vm0, %v1793_v16  ;;  %v1799_v56 = vadd.f32 %v1798_v44, %v1797_v42 }
 0x4bf   : > { %v1812_v63 = vsel %vm369_vm0, %v1810_v49, 0.0  ;;  %v1811_v62 = vsel %vm369_vm0, %v1809_v45, 0.0 }
 0x4c0   : > { %v1800_v53 = vrot.slane %v1799_v56, 4  ;;  %v1813_v32 = vadd.f32 %v1812_v63, %v1811_v62 }
 0x4c2   : > { %v1801_v41 = vadd.f32 %v1800_v53, %v1799_v56  ;;  %v1814_v23 = vrot.slane %v1813_v32, 4 }
 0x4c4   : > { %v1802_v27 = vrot.slane %v1801_v41, 2  ;;  %v1815_v15 = vadd.f32 %v1814_v23, %v1813_v32 }
 0x4c6   : > { %v1803_v14 = vadd.f32 %v1802_v27, %v1801_v41  ;;  %v1816_v55 = vrot.slane %v1815_v15, 2 }
 0x4c8   : > { %v1804_v57 = vrot.slane %v1803_v14, 1  ;;  %v1817_v47 = vadd.f32 %v1816_v55, %v1815_v15 }
 0x4ca   : > { %v1805_v19 = vadd.f32 %v1804_v57, %v1803_v14  ;;  %v1818_v34 = vrot.slane %v1817_v47, 1 }
 0x4cc   : > { %v1806_v3 = vsel %vm369_vm0, %v1805_v19, 0.0  ;;  %v1819_v0 = vadd.f32 %v1818_v34, %v1817_v47 }
 0x4cd   : > { %1807 = vadd.xlane.f32.xlu2 %v1806_v3 }
 0x4ce   : > { %v1820_v9 = vsel %vm369_vm0, %v1819_v0, 0.0 }
 0x4cf   : > { %1821 = vadd.xlane.f32.xlu1 %v1820_v9 }
 0x540   : > { %v1808_v25 = vpop.xlane.xlu2 %1807 }
 0x542   : > { %v1822_v43 = vpop.xlane.xlu1 %1821 }
 0x543   : > { %v1823_v35 = vsel %vm1367_vm2, %v1808_v25, %v1822_v43 }
 0x544   : > { %1825 = vst.msk [vmem:[%s336_s15] sm:$0x1] %vm1824_vm5, %v1823_v35 }
 0x545 PF: > { %s20_s27 = sadd.s32 1, %s2045_s27  }
 0x546   : > { %p17_p7 = scmp.ge.s32.totalorder %s20_s27, 4  }
 0x548   :  { %19 = sbr.rel (!%p17_p7) target bundleno = 1 (0x1), region = 103 }
 0x54d   :  { %1871 = vsyncpa [#allocation3], 1 }
 0x54e   :  { %1873 = vsyncpa [#allocation3 + $0x1], 1 }

</bundles_post_ra>
